<compile_context>
chip_gen: v7x
topology: tpu7x:2x2x1
jax: 0.10.0
libtpu: 0.0.40
codegen_flags: <defaults>
</compile_context>

<pallas_src>
import numpy as np

import jax
import jax.numpy as jnp
from jax import lax
from jax.experimental import pallas as pl
from jax.experimental.pallas import tpu as pltpu

_CH = 32     # channels of every conv layer
_FC = 128    # fc1 width


def _out_size(s):
    # 3x3 conv, stride 2, pad 1
    return (s - 1) // 2 + 1


# ---------------------------------------------------------------------------
# In-kernel building block: 3x3 / stride-2 / pad-1 conv + bias + ReLU as a
# single MXU matmul on a height-major, lane-flattened activation.
# ---------------------------------------------------------------------------
def _conv_layer(a, m_ref, b_ref):
    """a    : (H, Bblk, W*Cin) bf16 value; lane index is w*Cin + ci.
    m_ref : (3*W*Cin, Wo*Cout) bf16 folded weight.  Row kh*(W*Cin)+w*Cin+ci,
            column wo*Cout+co holds sum_kw [w == 2*wo+kw-1] * conv_w[kh,kw,ci,co].
    b_ref : (1, Wo*Cout) f32 bias, pre-tiled over Wo (lane-dense epilogue).
    Returns (Ho, Bblk, Wo*Cout) bf16.
    """
    H, Bblk, K = a.shape
    N = m_ref.shape[1]
    Ho = _out_size(H)

    # Vertical pad=1 (top) + zero rows at the bottom so the padded height is
    # exactly 2*Ho + 2 (even).  Major-dim ops only.
    Hp = 2 * Ho + 2
    ap = jnp.concatenate(
        [jnp.zeros((1, Bblk, K), a.dtype),
         a,
         jnp.zeros((Hp - 1 - H, Bblk, K), a.dtype)],
        axis=0)                                           # (Hp, Bblk, K)
    ar = ap.reshape(Ho + 1, 2, Bblk, K)                   # major-dim split only
    even, odd = ar[:, 0], ar[:, 1]
    # padded row for output row ho and vertical tap kh is 2*ho + kh:
    slabs = (even[0:Ho], odd[0:Ho], even[1:Ho + 1])       # each (Ho, Bblk, K)

    # One matmul per layer: (Ho*Bblk, 3K) @ (3K, Wo*Cout), f32 accumulation.
    # (Bblk % 8 == 0 keeps these reshapes tile-aligned.)
    patches = jnp.concatenate(
        [s.reshape(Ho * Bblk, K) for s in slabs], axis=1)  # (Ho*Bblk, 3K) bf16
    acc = jnp.dot(patches, m_ref[...], preferred_element_type=jnp.float32)
    out = jnp.maximum(acc + b_ref[...], 0.0)               # lane-dense epilogue
    return out.astype(jnp.bfloat16).reshape(Ho, Bblk, N)


# ---------------------------------------------------------------------------
# Fused kernel: conv1..conv4 -> fc1 -> qvals for `block_b` examples per step.
# ---------------------------------------------------------------------------
def _dqn_kernel(x_ref, m1_ref, b1_ref, m2_ref, b2_ref, m3_ref, b3_ref,
                m4_ref, b4_ref, wf_ref, bfc_ref, wq_ref, bq_ref, o_ref):
    a = x_ref[...]                                        # (H0, Bblk, W0) bf16
    a = _conv_layer(a, m1_ref, b1_ref)
    a = _conv_layer(a, m2_ref, b2_ref)
    a = _conv_layer(a, m3_ref, b3_ref)
    a = _conv_layer(a, m4_ref, b4_ref)                    # (H4, Bblk, W4*32) bf16
    H4 = a.shape[0]

    # fc1 as ONE matmul: flatten (h, w, c) per example along lanes.  fc1's
    # weight was pre-permuted on the host to match this (h, w, c) order.
    flat = jnp.concatenate([a[hh] for hh in range(H4)], axis=1)  # (Bblk, H4*W4*32)
    h = jnp.dot(flat, wf_ref[...], preferred_element_type=jnp.float32)
    h = jnp.maximum(h + bfc_ref[...], 0.0).astype(jnp.bfloat16)  # (Bblk, 128)

    q = jnp.dot(h, wq_ref[...], preferred_element_type=jnp.float32) + bq_ref[...]
    o_ref[...] = q.astype(o_ref.dtype)                    # (Bblk, A)


# ---------------------------------------------------------------------------
# Host-side helpers.
# ---------------------------------------------------------------------------
def _sel(w_in, w_out):
    """(3, W, Wo) 0/1: sel[kw, w, wo] = 1 iff w == 2*wo + kw - 1 (in range)."""
    s = np.zeros((3, w_in, w_out), np.float32)
    for kw in range(3):
        for wo in range(w_out):
            w = 2 * wo + kw - 1
            if 0 <= w < w_in:
                s[kw, w, wo] = 1.0
    return s


def dqn_forward(params, x_nchw, block_b=8):
    """Q-value path of DQN.forward (action=None) as one fused Pallas call."""
    B, Cx, H0, W0 = x_nchw.shape
    assert Cx == 1 and H0 == W0
    assert block_b % 8 == 0, "block_b must be a multiple of 8 (sublane tile)"
    A = params["qvals_w"].shape[1]

    sizes = [H0]
    for _ in range(4):
        sizes.append(_out_size(sizes[-1]))
    H4 = sizes[4]

    # ---- batch blocking ------------------------------------------------------
    n_blk = -(-B // block_b)
    Bpad = n_blk * block_b

    # Height-major, lane-flattened (w, c) input layout: (H0, Bpad, W0), bf16.
    x = jnp.transpose(x_nchw[:, 0], (1, 0, 2)).astype(jnp.bfloat16)
    x = jnp.pad(x, ((0, 0), (0, Bpad - B), (0, 0)))

    # ---- fold taps + stride-2 gather + channel mix into one weight per layer --
    ms, bs = [], []
    cin = 1
    for i in range(4):
        w_in, w_out = sizes[i], sizes[i + 1]
        wt = params[f"conv{i+1}_w"].astype(jnp.float32)      # (3, 3, cin, 32) HWIO
        sel = jnp.asarray(_sel(w_in, w_out))                  # (3_kw, W, Wo)
        m = jnp.einsum("xwv,yxcd->ywcvd", sel, wt)            # (3_kh, W, cin, Wo, 32)
        ms.append(m.reshape(3 * w_in * cin, w_out * _CH).astype(jnp.bfloat16))
        bias = jnp.tile(params[f"conv{i+1}_b"].reshape(1, 1, _CH), (1, w_out, 1))
        bs.append(bias.reshape(1, w_out * _CH).astype(jnp.float32))
        cin = _CH

    # fc1 rows: PyTorch NCHW-flatten order (c, h, w) -> kernel's (h, w, c) order.
    wf = (params["fc1_w"].reshape(_CH, H4, H4, _FC)
          .transpose(1, 2, 0, 3).reshape(H4 * H4 * _CH, _FC).astype(jnp.bfloat16))
    bfc = params["fc1_b"].reshape(1, _FC).astype(jnp.float32)
    wq = params["qvals_w"].astype(jnp.bfloat16)               # (128, A)
    bq = params["qvals_b"].reshape(1, A).astype(jnp.float32)

    inputs = (x, ms[0], bs[0], ms[1], bs[1], ms[2], bs[2], ms[3], bs[3],
              wf, bfc, wq, bq)

    def _rep(t):   # full-array block, same index every step -> VMEM resident
        n = t.ndim
        return pl.BlockSpec(t.shape, lambda i, n=n: (0,) * n)

    in_specs = [pl.BlockSpec((H0, block_b, W0), lambda i: (0, i, 0))]
    in_specs += [_rep(t) for t in inputs[1:]]

    # Rough cost estimate.
    flops = 0
    ci = 1
    for i in range(4):
        w_in, w_out = sizes[i], sizes[i + 1]
        flops += 2 * (sizes[i + 1] * Bpad) * (3 * w_in * ci) * (w_out * _CH)
        ci = _CH
    flops += 2 * Bpad * (H4 * H4 * _CH) * _FC + 2 * Bpad * _FC * A
    bytes_accessed = (sum(int(np.prod(t.shape)) * t.dtype.itemsize for t in inputs)
                      + Bpad * A * 4)

    out = pl.pallas_call(
        _dqn_kernel,
        out_shape=jax.ShapeDtypeStruct((Bpad, A), jnp.float32),
        grid=(n_blk,),
        in_specs=in_specs,
        out_specs=pl.BlockSpec((block_b, A), lambda i: (i, 0)),
        compiler_params=pltpu.CompilerParams(
            dimension_semantics=("parallel",)),
        cost_estimate=pl.CostEstimate(flops=int(flops), transcendentals=0,
                                      bytes_accessed=int(bytes_accessed)),
    )(*inputs)
    return out[:B]


# ---------------------------------------------------------------------------
# Pure-JAX f32 reference (lax.conv) mirroring the PyTorch module semantics.
# ---------------------------------------------------------------------------
def reference_forward(params, x_nchw):
    x = jnp.transpose(x_nchw, (0, 2, 3, 1))
    for i in range(1, 5):
        x = lax.conv_general_dilated(
            x, params[f"conv{i}_w"], window_strides=(2, 2),
            padding=((1, 1), (1, 1)),
            dimension_numbers=("NHWC", "HWIO", "NHWC"))
        x = jax.nn.relu(x + params[f"conv{i}_b"])
    B = x.shape[0]
    flat = jnp.transpose(x, (0, 3, 1, 2)).reshape(B, -1)   # PyTorch NCHW flatten
    h = jax.nn.relu(flat @ params["fc1_w"] + params["fc1_b"])
    return h @ params["qvals_w"] + params["qvals_b"]


# ---------------------------------------------------------------------------
# Deterministic parameter initialization (shapes follow the module __init__).
# ---------------------------------------------------------------------------
def init_params(key, img_size, actions):
    def dense(k, fan_in, shape):
        return (jax.random.normal(k, shape, dtype=jnp.float32)
                / jnp.sqrt(jnp.float32(fan_in)))

    s = img_size
    keys = jax.random.split(key, 12)
    params = {}
    cin = 1
    for i in range(1, 5):
        params[f"conv{i}_w"] = dense(keys[2 * i - 2], 9 * cin, (3, 3, cin, _CH))
        params[f"conv{i}_b"] = 0.01 * jax.random.normal(
            keys[2 * i - 1], (_CH,), dtype=jnp.float32)
        cin = _CH
        s = _out_size(s)
    feat = s * s * _CH
    params["fc1_w"] = dense(keys[8], feat, (feat, _FC))
    params["fc1_b"] = 0.01 * jax.random.normal(keys[9], (_FC,), dtype=jnp.float32)
    params["qvals_w"] = dense(keys[10], _FC, (_FC, actions))
    params["qvals_b"] = 0.01 * jax.random.normal(
        keys[11], (actions,), dtype=jnp.float32)
    return params


if __name__ == "__main__":
    # Small shapes (module default is 1x60x60); B=16 with block_b=8 gives a
    # 2-step "parallel" grid (exercises batch blocking + both v7x TensorCores).
    B, C, H, W = 16, 1, 32, 32
    actions = 4

    root = jax.random.PRNGKey(0)
    k_params, k_x = jax.random.split(root)
    params = init_params(k_params, H, actions)
    x = jax.random.normal(k_x, (B, C, H, W), dtype=jnp.float32)

    q = jax.block_until_ready(jax.jit(dqn_forward)(params, x))
    assert q.shape == (B, actions), q.shape

    q_ref = jax.block_until_ready(reference_forward(params, x))
    # tolerance sized for bf16 MXU operands with f32 accumulation
    if not bool(jnp.allclose(q, q_ref, atol=2e-2, rtol=2e-2)):
        raise AssertionError(f"mismatch:\n pallas={q}\n ref={q_ref}")

    print("KERNEL_OK")
</pallas_src>

<mosaic_0001>
module attributes {stable_mosaic.version = 11 : i64} {
  func.func @_dqn_kernel(%arg0: i32, %arg1: memref<32x8x32xbf16, #tpu.memory_space<vmem>>, %arg2: memref<96x512xbf16, #tpu.memory_space<vmem>>, %arg3: memref<1x512xf32, #tpu.memory_space<vmem>>, %arg4: memref<1536x256xbf16, #tpu.memory_space<vmem>>, %arg5: memref<1x256xf32, #tpu.memory_space<vmem>>, %arg6: memref<768x128xbf16, #tpu.memory_space<vmem>>, %arg7: memref<1x128xf32, #tpu.memory_space<vmem>>, %arg8: memref<384x64xbf16, #tpu.memory_space<vmem>>, %arg9: memref<1x64xf32, #tpu.memory_space<vmem>>, %arg10: memref<128x128xbf16, #tpu.memory_space<vmem>>, %arg11: memref<1x128xf32, #tpu.memory_space<vmem>>, %arg12: memref<128x4xbf16, #tpu.memory_space<vmem>>, %arg13: memref<1x4xf32, #tpu.memory_space<vmem>>, %arg14: memref<8x4xf32, #tpu.memory_space<vmem>>) attributes {dimension_semantics = [#tpu.dimension_semantics<parallel>], iteration_bounds = array<i64: 2>, scalar_prefetch = 0 : i64, scratch_operands = 0 : i64, tpu.core_type = #tpu.core_type<tc>, window_params = [{transform_indices = @transform_0, window_bounds = array<i64: 32, 8, 32>}, {pipeline_mode = #tpu.pipeline_mode<synchronous>, transform_indices = @transform_1, window_bounds = array<i64: 96, 512>}, {pipeline_mode = #tpu.pipeline_mode<synchronous>, transform_indices = @transform_2, window_bounds = array<i64: 1, 512>}, {pipeline_mode = #tpu.pipeline_mode<synchronous>, transform_indices = @transform_3, window_bounds = array<i64: 1536, 256>}, {pipeline_mode = #tpu.pipeline_mode<synchronous>, transform_indices = @transform_4, window_bounds = array<i64: 1, 256>}, {pipeline_mode = #tpu.pipeline_mode<synchronous>, transform_indices = @transform_5, window_bounds = array<i64: 768, 128>}, {pipeline_mode = #tpu.pipeline_mode<synchronous>, transform_indices = @transform_6, window_bounds = array<i64: 1, 128>}, {pipeline_mode = #tpu.pipeline_mode<synchronous>, transform_indices = @transform_7, window_bounds = array<i64: 384, 64>}, {pipeline_mode = #tpu.pipeline_mode<synchronous>, transform_indices = @transform_8, window_bounds = array<i64: 1, 64>}, {pipeline_mode = #tpu.pipeline_mode<synchronous>, transform_indices = @transform_9, window_bounds = array<i64: 128, 128>}, {pipeline_mode = #tpu.pipeline_mode<synchronous>, transform_indices = @transform_10, window_bounds = array<i64: 1, 128>}, {pipeline_mode = #tpu.pipeline_mode<synchronous>, transform_indices = @transform_11, window_bounds = array<i64: 128, 4>}, {pipeline_mode = #tpu.pipeline_mode<synchronous>, transform_indices = @transform_12, window_bounds = array<i64: 1, 4>}, {transform_indices = @transform_13, window_bounds = array<i64: 8, 4>}]} {
    %c0 = arith.constant 0 : index
    %c0_0 = arith.constant 0 : index
    %c0_1 = arith.constant 0 : index
    %0 = vector.load %arg1[%c0, %c0_0, %c0_1] : memref<32x8x32xbf16, #tpu.memory_space<vmem>>, vector<32x8x32xbf16>
    %cst = arith.constant 0.000000e+00 : bf16
    %1 = vector.broadcast %cst : bf16 to vector<1x8x32xbf16>
    %cst_2 = arith.constant 0.000000e+00 : bf16
    %2 = vector.broadcast %cst_2 : bf16 to vector<1x8x32xbf16>
    %3 = tpu.concatenate %1, %0, %2 in 0 : vector<1x8x32xbf16>, vector<32x8x32xbf16>, vector<1x8x32xbf16> -> vector<34x8x32xbf16>
    %4 = vector.shape_cast %3 : vector<34x8x32xbf16> to vector<17x2x8x32xbf16>
    %5 = vector.extract_strided_slice %4 {offsets = [0, 0, 0, 0], sizes = [17, 1, 8, 32], strides = [1, 1, 1, 1]} : vector<17x2x8x32xbf16> to vector<17x1x8x32xbf16>
    %6 = vector.shape_cast %5 : vector<17x1x8x32xbf16> to vector<17x8x32xbf16>
    %7 = vector.extract_strided_slice %4 {offsets = [0, 1, 0, 0], sizes = [17, 1, 8, 32], strides = [1, 1, 1, 1]} : vector<17x2x8x32xbf16> to vector<17x1x8x32xbf16>
    %8 = vector.shape_cast %7 : vector<17x1x8x32xbf16> to vector<17x8x32xbf16>
    %9 = vector.extract_strided_slice %6 {offsets = [0, 0, 0], sizes = [16, 8, 32], strides = [1, 1, 1]} : vector<17x8x32xbf16> to vector<16x8x32xbf16>
    %10 = vector.extract_strided_slice %8 {offsets = [0, 0, 0], sizes = [16, 8, 32], strides = [1, 1, 1]} : vector<17x8x32xbf16> to vector<16x8x32xbf16>
    %11 = vector.extract_strided_slice %6 {offsets = [1, 0, 0], sizes = [16, 8, 32], strides = [1, 1, 1]} : vector<17x8x32xbf16> to vector<16x8x32xbf16>
    %12 = vector.shape_cast %9 : vector<16x8x32xbf16> to vector<128x32xbf16>
    %13 = vector.shape_cast %10 : vector<16x8x32xbf16> to vector<128x32xbf16>
    %14 = vector.shape_cast %11 : vector<16x8x32xbf16> to vector<128x32xbf16>
    %15 = tpu.concatenate %12, %13, %14 in 1 : vector<128x32xbf16>, vector<128x32xbf16>, vector<128x32xbf16> -> vector<128x96xbf16>
    %c0_3 = arith.constant 0 : index
    %c0_4 = arith.constant 0 : index
    %16 = vector.load %arg2[%c0_3, %c0_4] : memref<96x512xbf16, #tpu.memory_space<vmem>>, vector<96x512xbf16>
    %cst_5 = arith.constant dense<0.000000e+00> : vector<128x512xf32>
    %17 = tpu.matmul %15, %16, %cst_5 {dimension_numbers = #tpu.dot_dimension_numbers<[1], [0], [0], [1], [0, 0, 1, 1], [], []>} : vector<128x96xbf16>, vector<96x512xbf16>, vector<128x512xf32> -> vector<128x512xf32>
    %c0_6 = arith.constant 0 : index
    %c0_7 = arith.constant 0 : index
    %18 = vector.load %arg3[%c0_6, %c0_7] : memref<1x512xf32, #tpu.memory_space<vmem>>, vector<1x512xf32>
    %19 = vector.broadcast %18 : vector<1x512xf32> to vector<128x512xf32>
    %20 = arith.addf %17, %19 : vector<128x512xf32>
    %cst_8 = arith.constant 0.000000e+00 : f32
    %21 = vector.broadcast %cst_8 : f32 to vector<128x512xf32>
    %22 = arith.maximumf %20, %21 : vector<128x512xf32>
    %23 = arith.truncf %22 : vector<128x512xf32> to vector<128x512xbf16>
    %24 = vector.shape_cast %23 : vector<128x512xbf16> to vector<16x8x512xbf16>
    %cst_9 = arith.constant 0.000000e+00 : bf16
    %25 = vector.broadcast %cst_9 : bf16 to vector<1x8x512xbf16>
    %cst_10 = arith.constant 0.000000e+00 : bf16
    %26 = vector.broadcast %cst_10 : bf16 to vector<1x8x512xbf16>
    %27 = tpu.concatenate %25, %24, %26 in 0 : vector<1x8x512xbf16>, vector<16x8x512xbf16>, vector<1x8x512xbf16> -> vector<18x8x512xbf16>
    %28 = vector.shape_cast %27 : vector<18x8x512xbf16> to vector<9x2x8x512xbf16>
    %29 = vector.extract_strided_slice %28 {offsets = [0, 0, 0, 0], sizes = [9, 1, 8, 512], strides = [1, 1, 1, 1]} : vector<9x2x8x512xbf16> to vector<9x1x8x512xbf16>
    %30 = vector.shape_cast %29 : vector<9x1x8x512xbf16> to vector<9x8x512xbf16>
    %31 = vector.extract_strided_slice %28 {offsets = [0, 1, 0, 0], sizes = [9, 1, 8, 512], strides = [1, 1, 1, 1]} : vector<9x2x8x512xbf16> to vector<9x1x8x512xbf16>
    %32 = vector.shape_cast %31 : vector<9x1x8x512xbf16> to vector<9x8x512xbf16>
    %33 = vector.extract_strided_slice %30 {offsets = [0, 0, 0], sizes = [8, 8, 512], strides = [1, 1, 1]} : vector<9x8x512xbf16> to vector<8x8x512xbf16>
    %34 = vector.extract_strided_slice %32 {offsets = [0, 0, 0], sizes = [8, 8, 512], strides = [1, 1, 1]} : vector<9x8x512xbf16> to vector<8x8x512xbf16>
    %35 = vector.extract_strided_slice %30 {offsets = [1, 0, 0], sizes = [8, 8, 512], strides = [1, 1, 1]} : vector<9x8x512xbf16> to vector<8x8x512xbf16>
    %36 = vector.shape_cast %33 : vector<8x8x512xbf16> to vector<64x512xbf16>
    %37 = vector.shape_cast %34 : vector<8x8x512xbf16> to vector<64x512xbf16>
    %38 = vector.shape_cast %35 : vector<8x8x512xbf16> to vector<64x512xbf16>
    %39 = tpu.concatenate %36, %37, %38 in 1 : vector<64x512xbf16>, vector<64x512xbf16>, vector<64x512xbf16> -> vector<64x1536xbf16>
    %c0_11 = arith.constant 0 : index
    %c0_12 = arith.constant 0 : index
    %40 = vector.load %arg4[%c0_11, %c0_12] : memref<1536x256xbf16, #tpu.memory_space<vmem>>, vector<1536x256xbf16>
    %cst_13 = arith.constant dense<0.000000e+00> : vector<64x256xf32>
    %41 = tpu.matmul %39, %40, %cst_13 {dimension_numbers = #tpu.dot_dimension_numbers<[1], [0], [0], [1], [0, 0, 1, 1], [], []>} : vector<64x1536xbf16>, vector<1536x256xbf16>, vector<64x256xf32> -> vector<64x256xf32>
    %c0_14 = arith.constant 0 : index
    %c0_15 = arith.constant 0 : index
    %42 = vector.load %arg5[%c0_14, %c0_15] : memref<1x256xf32, #tpu.memory_space<vmem>>, vector<1x256xf32>
    %43 = vector.broadcast %42 : vector<1x256xf32> to vector<64x256xf32>
    %44 = arith.addf %41, %43 : vector<64x256xf32>
    %cst_16 = arith.constant 0.000000e+00 : f32
    %45 = vector.broadcast %cst_16 : f32 to vector<64x256xf32>
    %46 = arith.maximumf %44, %45 : vector<64x256xf32>
    %47 = arith.truncf %46 : vector<64x256xf32> to vector<64x256xbf16>
    %48 = vector.shape_cast %47 : vector<64x256xbf16> to vector<8x8x256xbf16>
    %cst_17 = arith.constant 0.000000e+00 : bf16
    %49 = vector.broadcast %cst_17 : bf16 to vector<1x8x256xbf16>
    %cst_18 = arith.constant 0.000000e+00 : bf16
    %50 = vector.broadcast %cst_18 : bf16 to vector<1x8x256xbf16>
    %51 = tpu.concatenate %49, %48, %50 in 0 : vector<1x8x256xbf16>, vector<8x8x256xbf16>, vector<1x8x256xbf16> -> vector<10x8x256xbf16>
    %52 = vector.shape_cast %51 : vector<10x8x256xbf16> to vector<5x2x8x256xbf16>
    %53 = vector.extract_strided_slice %52 {offsets = [0, 0, 0, 0], sizes = [5, 1, 8, 256], strides = [1, 1, 1, 1]} : vector<5x2x8x256xbf16> to vector<5x1x8x256xbf16>
    %54 = vector.shape_cast %53 : vector<5x1x8x256xbf16> to vector<5x8x256xbf16>
    %55 = vector.extract_strided_slice %52 {offsets = [0, 1, 0, 0], sizes = [5, 1, 8, 256], strides = [1, 1, 1, 1]} : vector<5x2x8x256xbf16> to vector<5x1x8x256xbf16>
    %56 = vector.shape_cast %55 : vector<5x1x8x256xbf16> to vector<5x8x256xbf16>
    %57 = vector.extract_strided_slice %54 {offsets = [0, 0, 0], sizes = [4, 8, 256], strides = [1, 1, 1]} : vector<5x8x256xbf16> to vector<4x8x256xbf16>
    %58 = vector.extract_strided_slice %56 {offsets = [0, 0, 0], sizes = [4, 8, 256], strides = [1, 1, 1]} : vector<5x8x256xbf16> to vector<4x8x256xbf16>
    %59 = vector.extract_strided_slice %54 {offsets = [1, 0, 0], sizes = [4, 8, 256], strides = [1, 1, 1]} : vector<5x8x256xbf16> to vector<4x8x256xbf16>
    %60 = vector.shape_cast %57 : vector<4x8x256xbf16> to vector<32x256xbf16>
    %61 = vector.shape_cast %58 : vector<4x8x256xbf16> to vector<32x256xbf16>
    %62 = vector.shape_cast %59 : vector<4x8x256xbf16> to vector<32x256xbf16>
    %63 = tpu.concatenate %60, %61, %62 in 1 : vector<32x256xbf16>, vector<32x256xbf16>, vector<32x256xbf16> -> vector<32x768xbf16>
    %c0_19 = arith.constant 0 : index
    %c0_20 = arith.constant 0 : index
    %64 = vector.load %arg6[%c0_19, %c0_20] : memref<768x128xbf16, #tpu.memory_space<vmem>>, vector<768x128xbf16>
    %cst_21 = arith.constant dense<0.000000e+00> : vector<32x128xf32>
    %65 = tpu.matmul %63, %64, %cst_21 {dimension_numbers = #tpu.dot_dimension_numbers<[1], [0], [0], [1], [0, 0, 1, 1], [], []>} : vector<32x768xbf16>, vector<768x128xbf16>, vector<32x128xf32> -> vector<32x128xf32>
    %c0_22 = arith.constant 0 : index
    %c0_23 = arith.constant 0 : index
    %66 = vector.load %arg7[%c0_22, %c0_23] : memref<1x128xf32, #tpu.memory_space<vmem>>, vector<1x128xf32>
    %67 = vector.broadcast %66 : vector<1x128xf32> to vector<32x128xf32>
    %68 = arith.addf %65, %67 : vector<32x128xf32>
    %cst_24 = arith.constant 0.000000e+00 : f32
    %69 = vector.broadcast %cst_24 : f32 to vector<32x128xf32>
    %70 = arith.maximumf %68, %69 : vector<32x128xf32>
    %71 = arith.truncf %70 : vector<32x128xf32> to vector<32x128xbf16>
    %72 = vector.shape_cast %71 : vector<32x128xbf16> to vector<4x8x128xbf16>
    %cst_25 = arith.constant 0.000000e+00 : bf16
    %73 = vector.broadcast %cst_25 : bf16 to vector<1x8x128xbf16>
    %cst_26 = arith.constant 0.000000e+00 : bf16
    %74 = vector.broadcast %cst_26 : bf16 to vector<1x8x128xbf16>
    %75 = tpu.concatenate %73, %72, %74 in 0 : vector<1x8x128xbf16>, vector<4x8x128xbf16>, vector<1x8x128xbf16> -> vector<6x8x128xbf16>
    %76 = vector.shape_cast %75 : vector<6x8x128xbf16> to vector<3x2x8x128xbf16>
    %77 = vector.extract_strided_slice %76 {offsets = [0, 0, 0, 0], sizes = [3, 1, 8, 128], strides = [1, 1, 1, 1]} : vector<3x2x8x128xbf16> to vector<3x1x8x128xbf16>
    %78 = vector.shape_cast %77 : vector<3x1x8x128xbf16> to vector<3x8x128xbf16>
    %79 = vector.extract_strided_slice %76 {offsets = [0, 1, 0, 0], sizes = [3, 1, 8, 128], strides = [1, 1, 1, 1]} : vector<3x2x8x128xbf16> to vector<3x1x8x128xbf16>
    %80 = vector.shape_cast %79 : vector<3x1x8x128xbf16> to vector<3x8x128xbf16>
    %81 = vector.extract_strided_slice %78 {offsets = [0, 0, 0], sizes = [2, 8, 128], strides = [1, 1, 1]} : vector<3x8x128xbf16> to vector<2x8x128xbf16>
    %82 = vector.extract_strided_slice %80 {offsets = [0, 0, 0], sizes = [2, 8, 128], strides = [1, 1, 1]} : vector<3x8x128xbf16> to vector<2x8x128xbf16>
    %83 = vector.extract_strided_slice %78 {offsets = [1, 0, 0], sizes = [2, 8, 128], strides = [1, 1, 1]} : vector<3x8x128xbf16> to vector<2x8x128xbf16>
    %84 = vector.shape_cast %81 : vector<2x8x128xbf16> to vector<16x128xbf16>
    %85 = vector.shape_cast %82 : vector<2x8x128xbf16> to vector<16x128xbf16>
    %86 = vector.shape_cast %83 : vector<2x8x128xbf16> to vector<16x128xbf16>
    %87 = tpu.concatenate %84, %85, %86 in 1 : vector<16x128xbf16>, vector<16x128xbf16>, vector<16x128xbf16> -> vector<16x384xbf16>
    %c0_27 = arith.constant 0 : index
    %c0_28 = arith.constant 0 : index
    %88 = vector.load %arg8[%c0_27, %c0_28] : memref<384x64xbf16, #tpu.memory_space<vmem>>, vector<384x64xbf16>
    %cst_29 = arith.constant dense<0.000000e+00> : vector<16x64xf32>
    %89 = tpu.matmul %87, %88, %cst_29 {dimension_numbers = #tpu.dot_dimension_numbers<[1], [0], [0], [1], [0, 0, 1, 1], [], []>} : vector<16x384xbf16>, vector<384x64xbf16>, vector<16x64xf32> -> vector<16x64xf32>
    %c0_30 = arith.constant 0 : index
    %c0_31 = arith.constant 0 : index
    %90 = vector.load %arg9[%c0_30, %c0_31] : memref<1x64xf32, #tpu.memory_space<vmem>>, vector<1x64xf32>
    %91 = vector.broadcast %90 : vector<1x64xf32> to vector<16x64xf32>
    %92 = arith.addf %89, %91 : vector<16x64xf32>
    %cst_32 = arith.constant 0.000000e+00 : f32
    %93 = vector.broadcast %cst_32 : f32 to vector<16x64xf32>
    %94 = arith.maximumf %92, %93 : vector<16x64xf32>
    %95 = arith.truncf %94 : vector<16x64xf32> to vector<16x64xbf16>
    %96 = vector.shape_cast %95 : vector<16x64xbf16> to vector<2x8x64xbf16>
    %97 = vector.extract_strided_slice %96 {offsets = [0, 0, 0], sizes = [1, 8, 64], strides = [1, 1, 1]} : vector<2x8x64xbf16> to vector<1x8x64xbf16>
    %98 = vector.shape_cast %97 : vector<1x8x64xbf16> to vector<8x64xbf16>
    %99 = vector.extract_strided_slice %96 {offsets = [1, 0, 0], sizes = [1, 8, 64], strides = [1, 1, 1]} : vector<2x8x64xbf16> to vector<1x8x64xbf16>
    %100 = vector.shape_cast %99 : vector<1x8x64xbf16> to vector<8x64xbf16>
    %101 = tpu.concatenate %98, %100 in 1 : vector<8x64xbf16>, vector<8x64xbf16> -> vector<8x128xbf16>
    %c0_33 = arith.constant 0 : index
    %c0_34 = arith.constant 0 : index
    %102 = vector.load %arg10[%c0_33, %c0_34] : memref<128x128xbf16, #tpu.memory_space<vmem>>, vector<128x128xbf16>
    %cst_35 = arith.constant dense<0.000000e+00> : vector<8x128xf32>
    %103 = tpu.matmul %101, %102, %cst_35 {dimension_numbers = #tpu.dot_dimension_numbers<[1], [0], [0], [1], [0, 0, 1, 1], [], []>} : vector<8x128xbf16>, vector<128x128xbf16>, vector<8x128xf32> -> vector<8x128xf32>
    %c0_36 = arith.constant 0 : index
    %c0_37 = arith.constant 0 : index
    %104 = vector.load %arg11[%c0_36, %c0_37] : memref<1x128xf32, #tpu.memory_space<vmem>>, vector<1x128xf32>
    %105 = vector.broadcast %104 : vector<1x128xf32> to vector<8x128xf32>
    %106 = arith.addf %103, %105 : vector<8x128xf32>
    %cst_38 = arith.constant 0.000000e+00 : f32
    %107 = vector.broadcast %cst_38 : f32 to vector<8x128xf32>
    %108 = arith.maximumf %106, %107 : vector<8x128xf32>
    %109 = arith.truncf %108 : vector<8x128xf32> to vector<8x128xbf16>
    %c0_39 = arith.constant 0 : index
    %c0_40 = arith.constant 0 : index
    %110 = vector.load %arg12[%c0_39, %c0_40] : memref<128x4xbf16, #tpu.memory_space<vmem>>, vector<128x4xbf16>
    %cst_41 = arith.constant dense<0.000000e+00> : vector<8x4xf32>
    %111 = tpu.matmul %109, %110, %cst_41 {dimension_numbers = #tpu.dot_dimension_numbers<[1], [0], [0], [1], [0, 0, 1, 1], [], []>} : vector<8x128xbf16>, vector<128x4xbf16>, vector<8x4xf32> -> vector<8x4xf32>
    %c0_42 = arith.constant 0 : index
    %c0_43 = arith.constant 0 : index
    %112 = vector.load %arg13[%c0_42, %c0_43] : memref<1x4xf32, #tpu.memory_space<vmem>>, vector<1x4xf32>
    %113 = vector.broadcast %112 : vector<1x4xf32> to vector<8x4xf32>
    %114 = arith.addf %111, %113 : vector<8x4xf32>
    %c0_44 = arith.constant 0 : index
    %c0_45 = arith.constant 0 : index
    %115 = vector.load %arg14[%c0_44, %c0_45] : memref<8x4xf32, #tpu.memory_space<vmem>>, vector<8x4xf32>
    tpu.vector_store %arg14[%c0_44, %c0_45], %114 {strides = array<i32>} : memref<8x4xf32, #tpu.memory_space<vmem>>, vector<8x4xf32>,
    return
  }
  func.func @transform_0(%arg0: i32) -> (i32, i32, i32) {
    %c0_i32 = arith.constant 0 : i32
    %c0_i32_0 = arith.constant 0 : i32
    %c0_i32_1 = arith.constant 0 : i32
    return %c0_i32, %arg0, %c0_i32_0 : i32, i32, i32
  }
  func.func @transform_1(%arg0: i32) -> (i32, i32) {
    %c0_i32 = arith.constant 0 : i32
    %c0_i32_0 = arith.constant 0 : i32
    %c0_i32_1 = arith.constant 0 : i32
    return %c0_i32, %c0_i32_0 : i32, i32
  }
  func.func @transform_2(%arg0: i32) -> (i32, i32) {
    %c0_i32 = arith.constant 0 : i32
    %c0_i32_0 = arith.constant 0 : i32
    %c0_i32_1 = arith.constant 0 : i32
    return %c0_i32, %c0_i32_0 : i32, i32
  }
  func.func @transform_3(%arg0: i32) -> (i32, i32) {
    %c0_i32 = arith.constant 0 : i32
    %c0_i32_0 = arith.constant 0 : i32
    %c0_i32_1 = arith.constant 0 : i32
    return %c0_i32, %c0_i32_0 : i32, i32
  }
  func.func @transform_4(%arg0: i32) -> (i32, i32) {
    %c0_i32 = arith.constant 0 : i32
    %c0_i32_0 = arith.constant 0 : i32
    %c0_i32_1 = arith.constant 0 : i32
    return %c0_i32, %c0_i32_0 : i32, i32
  }
  func.func @transform_5(%arg0: i32) -> (i32, i32) {
    %c0_i32 = arith.constant 0 : i32
    %c0_i32_0 = arith.constant 0 : i32
    %c0_i32_1 = arith.constant 0 : i32
    return %c0_i32, %c0_i32_0 : i32, i32
  }
  func.func @transform_6(%arg0: i32) -> (i32, i32) {
    %c0_i32 = arith.constant 0 : i32
    %c0_i32_0 = arith.constant 0 : i32
    %c0_i32_1 = arith.constant 0 : i32
    return %c0_i32, %c0_i32_0 : i32, i32
  }
  func.func @transform_7(%arg0: i32) -> (i32, i32) {
    %c0_i32 = arith.constant 0 : i32
    %c0_i32_0 = arith.constant 0 : i32
    %c0_i32_1 = arith.constant 0 : i32
    return %c0_i32, %c0_i32_0 : i32, i32
  }
  func.func @transform_8(%arg0: i32) -> (i32, i32) {
    %c0_i32 = arith.constant 0 : i32
    %c0_i32_0 = arith.constant 0 : i32
    %c0_i32_1 = arith.constant 0 : i32
    return %c0_i32, %c0_i32_0 : i32, i32
  }
  func.func @transform_9(%arg0: i32) -> (i32, i32) {
    %c0_i32 = arith.constant 0 : i32
    %c0_i32_0 = arith.constant 0 : i32
    %c0_i32_1 = arith.constant 0 : i32
    return %c0_i32, %c0_i32_0 : i32, i32
  }
  func.func @transform_10(%arg0: i32) -> (i32, i32) {
    %c0_i32 = arith.constant 0 : i32
    %c0_i32_0 = arith.constant 0 : i32
    %c0_i32_1 = arith.constant 0 : i32
    return %c0_i32, %c0_i32_0 : i32, i32
  }
  func.func @transform_11(%arg0: i32) -> (i32, i32) {
    %c0_i32 = arith.constant 0 : i32
    %c0_i32_0 = arith.constant 0 : i32
    %c0_i32_1 = arith.constant 0 : i32
    return %c0_i32, %c0_i32_0 : i32, i32
  }
  func.func @transform_12(%arg0: i32) -> (i32, i32) {
    %c0_i32 = arith.constant 0 : i32
    %c0_i32_0 = arith.constant 0 : i32
    %c0_i32_1 = arith.constant 0 : i32
    return %c0_i32, %c0_i32_0 : i32, i32
  }
  func.func @transform_13(%arg0: i32) -> (i32, i32) {
    %c0_i32 = arith.constant 0 : i32
    %c0_i32_0 = arith.constant 0 : i32
    return %arg0, %c0_i32 : i32, i32
  }
}

</mosaic_0001>

<bundles_post_ra>
// kernel: dqn_forward.1
= control target key start
LH: loop header
LB: loop body
LE: loop exit
PB: predicated region body
PF: predicated region fallthrough
CT: control target
= control target key end

     0   :  { %s5635_s25 = smov 0   ;;  %s5637_s26 = smov 0   ;;  %s7193_s0 = inlined_call_operand.vmem [shape: bf16[32,16,32], index: 0, kind: input, shape index: {}]   ;;  %s7194_s1 = inlined_call_operand.vmem [shape: bf16[96,512], index: 1, kind: input, shape index: {}]   ;;  %s7195_s2 = inlined_call_operand.vmem [shape: f32[1,512], index: 2, kind: input, shape index: {}]   ;;  %s7196_s3 = inlined_call_operand.vmem [shape: bf16[1536,256], index: 3, kind: input, shape index: {}]   ;;  %s7197_s4 = inlined_call_operand.vmem [shape: f32[1,256], index: 4, kind: input, shape index: {}]   ;;  %s7198_s5 = inlined_call_operand.vmem [shape: bf16[768,128], index: 5, kind: input, shape index: {}]   ;;  %s7199_s6 = inlined_call_operand.vmem [shape: f32[1,128], index: 6, kind: input, shape index: {}]   ;;  %s7200_s7 = inlined_call_operand.vmem [shape: bf16[384,64], index: 7, kind: input, shape index: {}]   ;;  %s7201_s8 = inlined_call_operand.vmem [shape: f32[1,64], index: 8, kind: input, shape index: {}]   ;;  %s7202_s9 = inlined_call_operand.vmem [shape: bf16[128,128], index: 9, kind: input, shape index: {}]   ;;  %s7203_s10 = inlined_call_operand.vmem [shape: f32[1,128], index: 10, kind: input, shape index: {}]   ;;  %s7204_s11 = inlined_call_operand.vmem [shape: bf16[128,4], index: 11, kind: input, shape index: {}]   ;;  %s7205_s12 = inlined_call_operand.vmem [shape: f32[1,4], index: 12, kind: input, shape index: {}]   ;;  %s7206_s13 = inlined_call_operand.vmem [shape: f32[16,4], index: 13, kind: output, shape index: {}]  }
   0x1   :  { %s5639_s27 = smov 0  }
   0x2 LB: > { %s5652_s29 = sadd.s32 1, %s5558_s27   ;;  %s30_s14 = sadd.s32 1, %s5554_s26  ;;  %s5558_s27 = sphi %s5639_s27, %s7211_s27   ;;  %s5554_s26 = sphi %s5637_s26, %s7210_s26   ;;  %s5550_s25 = sphi %s5635_s25, %s7209_s25  }
   0x3   : > { %s27_s30 = ssub.s32 %s5558_s27, %s5652_s29  ;;  %p37_p1 = scmp.ne.s32.totalorder %s5554_s26, %s5550_s25 }
   0x4   : > { %p28_p0 = scmp.eq.s32.totalorder %s27_s30, 0  ;;  %p38_p2 = scmp.eq.s32.totalorder %s5558_s27, 0 }
   0x5   : > { %p4311_p4 = scmp.ge.s32.totalorder %s5558_s27, 2 }
   0x6   : > { %s5661_s15 = scalar_select %p28_p0, %s5554_s26, %s30_s14  }
   0x7   : > { %p39_p3 = por %p38_p2, %p37_p1  ;;  %377 = sbr.rel (%p4311_p4) target bundleno = 39 (0x27), region = 64 }
   0xe   : > { %380 = sbr.rel (!%p39_p3) target bundleno = 39 (0x27), region = 68  ;;  %s382_s16 = sand.u32 (%p39_p3), 1, %s5554_s26  }
   0xf   : > { %s4313_s17 = sshll.u32 (%p39_p3), %s5558_s27, 2  ;;  %s4312_s18 = sshll.u32 (%p39_p3), %s382_s16, 7 }
  0x10   : > { %s5669_s21 = scalar_lea.vmem (%p39_p3), %s7193_s0, %s4313_s17  ;;  %s5673_s22 = scalar_lea.vmem (%p39_p3), [#allocation2], %s4312_s18 }
  0x11   : > { %v402_v0 = vld [vmem:[%s5669_s21] sm:$0xf] (%p39_p3)  ;;  %v404_v1 = vld [vmem:[%s5669_s21 + $0x8] sm:$0xf] (%p39_p3)  ;;  %v406_v2 = vld [vmem:[%s5669_s21 + $0x10] sm:$0xf] (%p39_p3) }
  0x12   : > { %403 = vst [vmem:[%s5673_s22] sm:$0xf] (%p39_p3), %v402_v0  ;;  %405 = vst [vmem:[%s5673_s22 + $0x4] sm:$0xf] (%p39_p3), %v404_v1  ;;  %v408_v3 = vld [vmem:[%s5669_s21 + $0x18] sm:$0xf] (%p39_p3) }
  0x13   : > { %v410_v4 = vld [vmem:[%s5669_s21 + $0x20] sm:$0xf] (%p39_p3)  ;;  %407 = vst [vmem:[%s5673_s22 + $0x8] sm:$0xf] (%p39_p3), %v406_v2  ;;  %409 = vst [vmem:[%s5673_s22 + $0xc] sm:$0xf] (%p39_p3), %v408_v3 }
  0x14   : > { %411 = vst [vmem:[%s5673_s22 + $0x10] sm:$0xf] (%p39_p3), %v410_v4  ;;  %v412_v5 = vld [vmem:[%s5669_s21 + $0x28] sm:$0xf] (%p39_p3)  ;;  %v414_v6 = vld [vmem:[%s5669_s21 + $0x30] sm:$0xf] (%p39_p3) }
  0x15   : > { %v416_v7 = vld [vmem:[%s5669_s21 + $0x38] sm:$0xf]  ;;  %413 = vst [vmem:[%s5673_s22 + $0x14] sm:$0xf] %v412_v5  ;;  %415 = vst [vmem:[%s5673_s22 + $0x18] sm:$0xf] %v414_v6 }
  0x16   : > { %417 = vst [vmem:[%s5673_s22 + $0x1c] sm:$0xf] %v416_v7  ;;  %v418_v8 = vld [vmem:[%s5669_s21 + $0x40] sm:$0xf]  ;;  %v420_v9 = vld [vmem:[%s5669_s21 + $0x48] sm:$0xf] }
  0x17   : > { %v422_v10 = vld [vmem:[%s5669_s21 + $0x50] sm:$0xf]  ;;  %419 = vst [vmem:[%s5673_s22 + $0x20] sm:$0xf] %v418_v8  ;;  %421 = vst [vmem:[%s5673_s22 + $0x24] sm:$0xf] %v420_v9 }
  0x18   : > { %423 = vst [vmem:[%s5673_s22 + $0x28] sm:$0xf] %v422_v10  ;;  %v424_v11 = vld [vmem:[%s5669_s21 + $0x58] sm:$0xf]  ;;  %v426_v12 = vld [vmem:[%s5669_s21 + $0x60] sm:$0xf] }
  0x19   : > { %v428_v13 = vld [vmem:[%s5669_s21 + $0x68] sm:$0xf]  ;;  %425 = vst [vmem:[%s5673_s22 + $0x2c] sm:$0xf] %v424_v11  ;;  %427 = vst [vmem:[%s5673_s22 + $0x30] sm:$0xf] %v426_v12 }
  0x1a   : > { %429 = vst [vmem:[%s5673_s22 + $0x34] sm:$0xf] %v428_v13  ;;  %v430_v14 = vld [vmem:[%s5669_s21 + $0x70] sm:$0xf]  ;;  %v432_v15 = vld [vmem:[%s5669_s21 + $0x78] sm:$0xf] }
  0x1b   : > { %v434_v16 = vld [vmem:[%s5669_s21 + $0x80] sm:$0xf]  ;;  %431 = vst [vmem:[%s5673_s22 + $0x38] sm:$0xf] %v430_v14  ;;  %433 = vst [vmem:[%s5673_s22 + $0x3c] sm:$0xf] %v432_v15 }
  0x1c   : > { %435 = vst [vmem:[%s5673_s22 + $0x40] sm:$0xf] %v434_v16  ;;  %v436_v17 = vld [vmem:[%s5669_s21 + $0x88] sm:$0xf]  ;;  %v438_v18 = vld [vmem:[%s5669_s21 + $0x90] sm:$0xf] }
  0x1d   : > { %v440_v19 = vld [vmem:[%s5669_s21 + $0x98] sm:$0xf]  ;;  %437 = vst [vmem:[%s5673_s22 + $0x44] sm:$0xf] %v436_v17  ;;  %439 = vst [vmem:[%s5673_s22 + $0x48] sm:$0xf] %v438_v18 }
  0x1e   : > { %441 = vst [vmem:[%s5673_s22 + $0x4c] sm:$0xf] %v440_v19  ;;  %v442_v20 = vld [vmem:[%s5669_s21 + $0xa0] sm:$0xf]  ;;  %v444_v21 = vld [vmem:[%s5669_s21 + $0xa8] sm:$0xf] }
  0x1f   : > { %v446_v22 = vld [vmem:[%s5669_s21 + $0xb0] sm:$0xf]  ;;  %443 = vst [vmem:[%s5673_s22 + $0x50] sm:$0xf] %v442_v20  ;;  %445 = vst [vmem:[%s5673_s22 + $0x54] sm:$0xf] %v444_v21 }
  0x20   : > { %447 = vst [vmem:[%s5673_s22 + $0x58] sm:$0xf] %v446_v22  ;;  %v448_v23 = vld [vmem:[%s5669_s21 + $0xb8] sm:$0xf]  ;;  %v450_v24 = vld [vmem:[%s5669_s21 + $0xc0] sm:$0xf] }
  0x21   : > { %v452_v25 = vld [vmem:[%s5669_s21 + $0xc8] sm:$0xf]  ;;  %449 = vst [vmem:[%s5673_s22 + $0x5c] sm:$0xf] %v448_v23  ;;  %451 = vst [vmem:[%s5673_s22 + $0x60] sm:$0xf] %v450_v24 }
  0x22   : > { %453 = vst [vmem:[%s5673_s22 + $0x64] sm:$0xf] %v452_v25  ;;  %v454_v26 = vld [vmem:[%s5669_s21 + $0xd0] sm:$0xf]  ;;  %v456_v27 = vld [vmem:[%s5669_s21 + $0xd8] sm:$0xf] }
  0x23   : > { %v458_v28 = vld [vmem:[%s5669_s21 + $0xe0] sm:$0xf]  ;;  %455 = vst [vmem:[%s5673_s22 + $0x68] sm:$0xf] %v454_v26  ;;  %457 = vst [vmem:[%s5673_s22 + $0x6c] sm:$0xf] %v456_v27 }
  0x24   : > { %459 = vst [vmem:[%s5673_s22 + $0x70] sm:$0xf] %v458_v28  ;;  %v460_v29 = vld [vmem:[%s5669_s21 + $0xe8] sm:$0xf]  ;;  %v462_v30 = vld [vmem:[%s5669_s21 + $0xf0] sm:$0xf] }
  0x25   : > { %v464_v31 = vld [vmem:[%s5669_s21 + $0xf8] sm:$0xf]  ;;  %461 = vst [vmem:[%s5673_s22 + $0x74] sm:$0xf] %v460_v29  ;;  %463 = vst [vmem:[%s5673_s22 + $0x78] sm:$0xf] %v462_v30 }
  0x26   : > { %465 = vst [vmem:[%s5673_s22 + $0x7c] sm:$0xf] %v464_v31 }
  0x27 PF: > { %p4314_p5 = scmp.ge.s32.totalorder %s5558_s27, 1  ;;  %p551_p6 = scmp.lt.s32.totalorder %s5558_s27, 3 }
  0x29   : > { %p552_p7 = pnand %p4314_p5, %p551_p6 }
  0x2a   : > { %s558_s23 = sand.u32 (!%p552_p7), 1, %s5550_s25   ;;  %v5124_v32 = vld [vmem:[%s7194_s1 + $0x4] ss:$16 sps:$4 sm:$0xff] (!%p552_p7)   ;;  %v5560_v33 = vmov (!%p552_p7), 0   ;;  %v5126_v34 = vld [vmem:[%s7194_s1 + $0xc] ss:$16 sps:$4 sm:$0xff] (!%p552_p7)  }
  0x2b   : > { %555 = sbr.rel (%p552_p7) target bundleno = 1972 (0x7b4), region = 109  ;;  %s4315_s24 = sshll.u32 (!%p552_p7), %s558_s23, 7  ;;  %1016 = vmatprep.mubr.bf16.mxu0 (!%p552_p7), %v5560_v33  ;;  %1129 = vmatprep.mubr.bf16.mxu1 (!%p552_p7), %v5560_v33  ;;  %v5128_v35 = vld [vmem:[%s7194_s1] ss:$16 sps:$4 sm:$0xff] (!%p552_p7)   ;;  %v5129_v3 = vld [vmem:[%s7194_s1 + $0x8] ss:$16 sps:$4 sm:$0xff] (!%p552_p7)  }
  0x2c   : > { %s5751_s20 = scalar_lea.vmem (!%p552_p7), [#allocation2], %s4315_s24  ;;  %984 = vmatprep.subr.bf16.mxu0 (!%p552_p7), %v5124_v32  ;;  %1097 = vmatprep.subr.bf16.mxu1 (!%p552_p7), %v5126_v34  ;;  %s5561_s25 = smov (!%p552_p7), 32   ;;  %v5130_v4 = vld [vmem:[%s7194_s1 + $0x24] ss:$16 sps:$4 sm:$0xff] (!%p552_p7)   ;;  %v5132_v5 = vld [vmem:[%s7194_s1 + $0x2c] ss:$16 sps:$4 sm:$0xff] (!%p552_p7)  }
  0x2d   : > { %v5101_v36 = vld [vmem:[%s5751_s20] ss:$8 sps:$4 sm:$0xff] (!%p552_p7)   ;;  %v5755_v37 = vld [vmem:[%s5751_s20 + $0x4] sm:$0xf] (!%p552_p7)  ;;  %v5758_v38 = vld [vmem:[%s5751_s20 + $0xc] sm:$0xf] (!%p552_p7)  ;;  %985 = vmatpush1.bf16.msra.mxu0 (!%p552_p7), %v5128_v35  ;;  %1098 = vmatpush1.bf16.msra.mxu1 (!%p552_p7), %v5129_v3 }
  0x2e   : > { %717 = vrot.lane.b32.xlu0 (!%p552_p7), %v5101_v36, %s5561_s25  ;;  %v4333_v39 = vcombine.low (!%p552_p7), %v5755_v37, %v5758_v38  ;;  %v5103_v40 = vld [vmem:[%s5751_s20 + $0x10] ss:$8 sps:$4 sm:$0xff] (!%p552_p7)   ;;  %v5765_v41 = vld [vmem:[%s5751_s20 + $0x14] sm:$0xf] (!%p552_p7)  ;;  %v5768_v42 = vld [vmem:[%s5751_s20 + $0x1c] sm:$0xf] (!%p552_p7)  ;;  %986 = vmatprep.subr.bf16.mxu0 (!%p552_p7), %v5130_v4  ;;  %v4317_v35 = vcombine.low (!%p552_p7), %v5560_v33, %v5755_v37 }
  0x2f   : > { %v4318_v43 = vcombine.low (!%p552_p7), %v5758_v38, %v5765_v41  ;;  %719 = vrot.lane.b32.xlu1 (!%p552_p7), %v5103_v40, %s5561_s25  ;;  %v4334_v44 = vcombine.low (!%p552_p7), %v5765_v41, %v5768_v42  ;;  %v5776_v45 = vld [vmem:[%s5751_s20 + $0x24] sm:$0xf] (!%p552_p7)  ;;  %v5779_v46 = vld [vmem:[%s5751_s20 + $0x2c] sm:$0xf] (!%p552_p7)  ;;  %s5562_s21 = smov (!%p552_p7), 64   ;;  %1099 = vmatprep.subr.bf16.mxu1 (!%p552_p7), %v5132_v5  ;;  %vm759_vm0 = vcmask (!%p552_p7), 261120  }
  0x30   : > { %v4319_v47 = vcombine.low (!%p552_p7), %v5768_v42, %v5776_v45  ;;  %v5106_v48 = vld [vmem:[%s5751_s20 + $0x20] ss:$8 sps:$4 sm:$0xff] (!%p552_p7)   ;;  %v5786_v49 = vld [vmem:[%s5751_s20 + $0x34] sm:$0xf] (!%p552_p7)  ;;  %v5789_v50 = vld [vmem:[%s5751_s20 + $0x3c] sm:$0xf] (!%p552_p7)  ;;  %v4335_v53 = vcombine.low (!%p552_p7), %v5776_v45, %v5779_v46 }
  0x31   : > { %v4320_v51 = vcombine.low (!%p552_p7), %v5779_v46, %v5786_v49  ;;  %v5794_v52 = vld [vmem:[%s5751_s20 + $0x44] sm:$0xf] (!%p552_p7)  ;;  %v5802_v55 = vld [vmem:[%s5751_s20 + $0x4c] sm:$0xf] (!%p552_p7)  ;;  %v5805_v56 = vld [vmem:[%s5751_s20 + $0x54] sm:$0xf] (!%p552_p7)  ;;  %v4336_v61 = vcombine.low (!%p552_p7), %v5786_v49, %v5789_v50 }
  0x32   : > { %743 = vrot.lane.b32.xlu0 %v4333_v39, %s5562_s21  ;;  %v4321_v54 = vcombine.low %v5789_v50, %v5794_v52  ;;  %v5109_v57 = vld [vmem:[%s5751_s20 + $0x30] ss:$8 sps:$4 sm:$0xff]   ;;  %v4322_v58 = vcombine.low %v5802_v55, %v5805_v56  ;;  %v5812_v59 = vld [vmem:[%s5751_s20 + $0x5c] sm:$0xf]  ;;  %v5815_v60 = vld [vmem:[%s5751_s20 + $0x64] sm:$0xf]  ;;  %v4337_v8 = vcombine.low %v5794_v52, %v5802_v55 }
  0x33   : > { %745 = vrot.lane.b32.xlu1 %v4334_v44, %s5562_s21  ;;  %v5821_v62 = vld [vmem:[%s5751_s20 + $0x6c] sm:$0xf]  ;;  %v4323_v63 = vcombine.low %v5812_v59, %v5815_v60  ;;  %v5826_v0 = vld [vmem:[%s5751_s20 + $0x74] sm:$0xf]  ;;  %v5112_v1 = vld [vmem:[%s5751_s20 + $0x40] ss:$8 sps:$4 sm:$0xff]   ;;  %v4338_v15 = vcombine.low %v5805_v56, %v5812_v59 }
  0x34   : > { %v4324_v2 = vcombine.low %v5821_v62, %v5826_v0  ;;  %v5134_v6 = vld [vmem:[%s7194_s1 + $0x20] ss:$16 sps:$4 sm:$0xff]   ;;  %v5135_v7 = vld [vmem:[%s7194_s1 + $0x28] ss:$16 sps:$4 sm:$0xff]   ;;  %v5136_v10 = vld [vmem:[%s7194_s1 + $0x44] ss:$16 sps:$4 sm:$0xff]   ;;  %v4339_v23 = vcombine.low %v5815_v60, %v5821_v62 }
  0x35   : > { %v5115_v9 = vld [vmem:[%s5751_s20 + $0x50] ss:$8 sps:$4 sm:$0xff]   ;;  %987 = vmatpush1.bf16.msra.mxu0 %v5134_v6  ;;  %v5138_v11 = vld [vmem:[%s7194_s1 + $0x4c] ss:$16 sps:$4 sm:$0xff]   ;;  %1100 = vmatpush1.bf16.msra.mxu1 %v5135_v7  ;;  %v5142_v14 = vld [vmem:[%s7194_s1 + $0x64] ss:$16 sps:$4 sm:$0xff]  }
  0x36   : > { %721 = vrot.lane.b32.xlu0 %v5106_v48, %s5561_s25  ;;  %v5140_v12 = vld [vmem:[%s7194_s1 + $0x40] ss:$16 sps:$4 sm:$0xff]   ;;  %988 = vmatprep.subr.bf16.mxu0 %v5136_v10  ;;  %v5141_v13 = vld [vmem:[%s7194_s1 + $0x48] ss:$16 sps:$4 sm:$0xff]   ;;  %v5144_v17 = vld [vmem:[%s7194_s1 + $0x6c] ss:$16 sps:$4 sm:$0xff]  }
  0x37   : > { %747 = vrot.lane.b32.xlu1 %v4335_v53, %s5562_s21  ;;  %v5118_v16 = vld [vmem:[%s5751_s20 + $0x60] ss:$8 sps:$4 sm:$0xff]   ;;  %1101 = vmatprep.subr.bf16.mxu1 %v5138_v11  ;;  %v5148_v19 = vld [vmem:[%s7194_s1 + $0x84] ss:$16 sps:$4 sm:$0xff]   ;;  %v636_v20 = vld [vmem:[%s5751_s20 + $0x7c] sm:$0xf] }
  0x38   : > { %v5146_v18 = vld [vmem:[%s7194_s1 + $0x60] ss:$16 sps:$4 sm:$0xff]   ;;  %v5147_v21 = vld [vmem:[%s7194_s1 + $0x68] ss:$16 sps:$4 sm:$0xff]   ;;  %v5150_v22 = vld [vmem:[%s7194_s1 + $0x8c] ss:$16 sps:$4 sm:$0xff]   ;;  %v4340_v30 = vcombine.low %v5826_v0, %v636_v20 }
  0x39   : > { %989 = vmatpush1.bf16.msra.mxu0 %v5140_v12  ;;  %1102 = vmatpush1.bf16.msra.mxu1 %v5141_v13  ;;  %v5121_v24 = vld [vmem:[%s5751_s20 + $0x70] ss:$8 sps:$4 sm:$0xff]   ;;  %v5154_v27 = vld [vmem:[%s7194_s1 + $0xa4] ss:$16 sps:$4 sm:$0xff]   ;;  %v5156_v28 = vld [vmem:[%s7194_s1 + $0xac] ss:$16 sps:$4 sm:$0xff]  }
  0x3a   : > { %723 = vrot.lane.b32.xlu0 %v5109_v57, %s5561_s25  ;;  %990 = vmatprep.subr.bf16.mxu0 %v5142_v14  ;;  %v5152_v25 = vld [vmem:[%s7194_s1 + $0x80] ss:$16 sps:$4 sm:$0xff]   ;;  %v5153_v26 = vld [vmem:[%s7194_s1 + $0x88] ss:$16 sps:$4 sm:$0xff]   ;;  %v5162_v32 = vld [vmem:[%s7196_s3 + $0x104] ss:$8 sps:$4 sm:$0xff]  }
  0x3b   : > { %749 = vrot.lane.b32.xlu1 %v4336_v61, %s5562_s21  ;;  %1103 = vmatprep.subr.bf16.mxu1 %v5144_v17  ;;  %v5158_v29 = vld [vmem:[%s7194_s1 + $0xa0] ss:$16 sps:$4 sm:$0xff]   ;;  %v5159_v31 = vld [vmem:[%s7194_s1 + $0xa8] ss:$16 sps:$4 sm:$0xff]   ;;  %v5165_v34 = vld [vmem:[%s7196_s3 + $0x4] ss:$8 sps:$4 sm:$0xff]  }
  0x3c   : > { %vm784_vm1 = vcmask 523264   ;;  %vm967_vm2 = vcmask 785408   ;;  %v5160_v40 = vld [vmem:[%s7196_s3 + $0x100] ss:$8 sps:$4 sm:$0xff]   ;;  %v5168_v48 = vld [vmem:[%s7196_s3 + $0x114] ss:$8 sps:$4 sm:$0xff]  }
  0x3d   : > { %991 = vmatpush1.bf16.msra.mxu0 %v5146_v18  ;;  %1104 = vmatpush1.bf16.msra.mxu1 %v5147_v21  ;;  %v5163_v44 = vld [vmem:[%s7196_s3] ss:$8 sps:$4 sm:$0xff]   ;;  %v5171_v53 = vld [vmem:[%s7196_s3 + $0x14] ss:$8 sps:$4 sm:$0xff]   ;;  %v5169_v3 = vld [vmem:[%s7196_s3 + $0x10] ss:$8 sps:$4 sm:$0xff]  }
  0x3e   : > { %725 = vrot.lane.b32.xlu0 %v5112_v1, %s5561_s25  ;;  %992 = vmatprep.subr.bf16.mxu0 %v5148_v19  ;;  %v5166_v1 = vld [vmem:[%s7196_s3 + $0x110] ss:$8 sps:$4 sm:$0xff]   ;;  %v5174_v4 = vld [vmem:[%s7196_s3 + $0x124] ss:$8 sps:$4 sm:$0xff]   ;;  %v5180_v38 = vld [vmem:[%s7196_s3 + $0x134] ss:$8 sps:$4 sm:$0xff]  }
  0x3f   : > { %751 = vrot.lane.b32.xlu1 %v4337_v8, %s5562_s21  ;;  %1105 = vmatprep.subr.bf16.mxu1 %v5150_v22  ;;  %v5177_v5 = vld [vmem:[%s7196_s3 + $0x24] ss:$8 sps:$4 sm:$0xff]   ;;  %v5172_v8 = vld [vmem:[%s7196_s3 + $0x120] ss:$8 sps:$4 sm:$0xff]   ;;  %v5183_v41 = vld [vmem:[%s7196_s3 + $0x34] ss:$8 sps:$4 sm:$0xff]  }
  0x40   : > { %v5178_v11 = vld [vmem:[%s7196_s3 + $0x130] ss:$8 sps:$4 sm:$0xff]   ;;  %v5186_v13 = vld [vmem:[%s7196_s3 + $0x144] ss:$8 sps:$4 sm:$0xff]   ;;  %v5184_v17 = vld [vmem:[%s7196_s3 + $0x140] ss:$8 sps:$4 sm:$0xff]  }
  0x41   : > { %993 = vmatpush1.bf16.msra.mxu0 %v5152_v25  ;;  %1106 = vmatpush1.bf16.msra.mxu1 %v5153_v26  ;;  %v5181_v12 = vld [vmem:[%s7196_s3 + $0x30] ss:$8 sps:$4 sm:$0xff]   ;;  %v5189_v14 = vld [vmem:[%s7196_s3 + $0x44] ss:$8 sps:$4 sm:$0xff]   ;;  %v5187_v18 = vld [vmem:[%s7196_s3 + $0x40] ss:$8 sps:$4 sm:$0xff]  }
  0x42   : > { %727 = vrot.lane.b32.xlu0 %v5115_v9, %s5561_s25  ;;  %994 = vmatprep.subr.bf16.mxu0 %v5154_v27  ;;  %v5175_v9 = vld [vmem:[%s7196_s3 + $0x20] ss:$8 sps:$4 sm:$0xff]   ;;  %v5192_v42 = vld [vmem:[%s7196_s3 + $0x154] ss:$8 sps:$4 sm:$0xff]   ;;  %v5190_v20 = vld [vmem:[%s7196_s3 + $0x150] ss:$8 sps:$4 sm:$0xff]  }
  0x43   : > { %753 = vrot.lane.b32.xlu1 %v4338_v15, %s5562_s21  ;;  %1107 = vmatprep.subr.bf16.mxu1 %v5156_v28  ;;  %v5195_v45 = vld [vmem:[%s7196_s3 + $0x54] ss:$8 sps:$4 sm:$0xff]   ;;  %v5193_v21 = vld [vmem:[%s7196_s3 + $0x50] ss:$8 sps:$4 sm:$0xff]   ;;  %v5198_v22 = vld [vmem:[%s7196_s3 + $0x164] ss:$8 sps:$4 sm:$0xff]  }
  0x44   : > { %v5196_v26 = vld [vmem:[%s7196_s3 + $0x160] ss:$8 sps:$4 sm:$0xff]   ;;  %v5204_v46 = vld [vmem:[%s7196_s3 + $0x174] ss:$8 sps:$4 sm:$0xff]   ;;  %v5241_v0 = vld [vmem:[%s7196_s3 + $0xd0] ss:$8 sps:$4 sm:$0xff]  }
  0x45   : > { %995 = vmatpush1.bf16.msra.mxu0 %v5158_v29  ;;  %1108 = vmatpush1.bf16.msra.mxu1 %v5159_v31  ;;  %v5199_v27 = vld [vmem:[%s7196_s3 + $0x60] ss:$8 sps:$4 sm:$0xff]   ;;  %v5207_v49 = vld [vmem:[%s7196_s3 + $0x74] ss:$8 sps:$4 sm:$0xff]   ;;  %v5202_v29 = vld [vmem:[%s7196_s3 + $0x170] ss:$8 sps:$4 sm:$0xff]  }
  0x46   : > { %729 = vrot.lane.b32.xlu0 %v5118_v16, %s5561_s25  ;;  %2735 = vmatprep.subr.bf16.mxu0 %v5162_v32  ;;  %v5210_v31 = vld [vmem:[%s7196_s3 + $0x184] ss:$8 sps:$4 sm:$0xff]   ;;  %v5216_v50 = vld [vmem:[%s7196_s3 + $0x194] ss:$8 sps:$4 sm:$0xff]   ;;  %vm5564_vm3 = vmmov 0   ;;  %vm4247_vm4 = vcmask 31744  }
  0x47   : > { %755 = vrot.lane.b32.xlu1 %v4339_v23, %s5562_s21  ;;  %2662 = vmatprep.subr.bf16.mxu1 %v5165_v34  ;;  %v5201_v23 = vld [vmem:[%s7196_s3 + $0x64] ss:$8 sps:$4 sm:$0xff]   ;;  %v5219_v52 = vld [vmem:[%s7196_s3 + $0x94] ss:$8 sps:$4 sm:$0xff]  }
  0x48   : > { %v5213_v32 = vld [vmem:[%s7196_s3 + $0x84] ss:$8 sps:$4 sm:$0xff]   ;;  %v5228_v55 = vld [vmem:[%s7196_s3 + $0x1b4] ss:$8 sps:$4 sm:$0xff]  }
  0x49   : > { %v5231_v56 = vld [vmem:[%s7196_s3 + $0xb4] ss:$8 sps:$4 sm:$0xff]  }
  0x4a   : > { %731 = vrot.lane.b32.xlu0 %v5121_v24, %s5561_s25  ;;  %v5243_v62 = vld [vmem:[%s7196_s3 + $0xd4] ss:$8 sps:$4 sm:$0xff]   ;;  %s7207_s25 = sadd.s32 4294967295, %s5558_s27  }
  0x4b   : > { %757 = vrot.lane.b32.xlu1 %v4340_v30, %s5562_s21  ;;  %v5205_v30 = vld [vmem:[%s7196_s3 + $0x70] ss:$8 sps:$4 sm:$0xff]   ;;  %p600_p8 = scmp.lt.s32.totalorder %s7207_s25, 1  ;;  %s7208_s28 = smov %s7207_s25 }
  0x4d   : > { %s7213_s28 = smov (!%p600_p8, %s7208_s28), 1 }
  0x4e   : > { %s4316_s16 = sshll.u32 %s7213_s28, 3 }
  0x4f   : > { %s603_s22 = scalar_lea.vmem %s7206_s13, %s4316_s16 }
  0xa0   : > { %v718_v36 = vpop.permute.xlu0 %717 }
  0xa1   : > { %v720_v39 = vpop.permute.xlu1 %719  ;;  %v762_v37 = vsel %vm759_vm0, %v4317_v35, %v718_v36  ;;  %v5208_v36 = vld [vmem:[%s7196_s3 + $0x180] ss:$8 sps:$4 sm:$0xff]  }
  0xa2   : > { %v765_v6 = vsel %vm759_vm0, %v4318_v43, %v720_v39  ;;  %v5211_v39 = vld [vmem:[%s7196_s3 + $0x80] ss:$8 sps:$4 sm:$0xff]  }
  0xa4   : > { %v744_v57 = vpop.permute.xlu0 %743 }
  0xa5   : > { %v786_v61 = vsel %vm784_vm1, %v762_v37, %v744_v57  ;;  %v746_v7 = vpop.permute.xlu1 %745  ;;  %v5225_v37 = vld [vmem:[%s7196_s3 + $0xa4] ss:$8 sps:$4 sm:$0xff]  }
  0xa6   : > { %4365 = vmatmul.mubr.msk.bf16.vlgmr.msra.gmra.mrb[0].mxu0 %vm967_vm2, %v786_v61  ;;  %4373 = vmatmul.mubr.msk.bf16.vlgmr.msra.gmra.mrb[0].mxu1 %vm967_vm2, %v786_v61  ;;  %v788_v10 = vsel %vm784_vm1, %v765_v6, %v746_v7  ;;  %v5229_v6 = vld [vmem:[%s7196_s3 + $0xb0] ss:$8 sps:$4 sm:$0xff]   ;;  %v5234_v7 = vld [vmem:[%s7196_s3 + $0x1c4] ss:$8 sps:$4 sm:$0xff]  }
  0xa7   : > { %1026 = vmatprep.mubr.bf16.mxu0 %v5560_v33  ;;  %1139 = vmatprep.mubr.bf16.mxu1 %v5560_v33 }
  0xa8   : > { %2736 = vmatpush1.bf16.msra.mxu0 %v5160_v40  ;;  %2663 = vmatpush1.bf16.msra.mxu1 %v5163_v44  ;;  %v722_v43 = vpop.permute.xlu0 %721  ;;  %v5214_v44 = vld [vmem:[%s7196_s3 + $0x190] ss:$8 sps:$4 sm:$0xff]  }
  0xa9   : > { %2737 = vmatprep.subr.bf16.mxu0 %v5168_v48  ;;  %2664 = vmatprep.subr.bf16.mxu1 %v5171_v53  ;;  %v768_v15 = vsel %vm759_vm0, %v4319_v47, %v722_v43  ;;  %v748_v16 = vpop.permute.xlu1 %747  ;;  %v5217_v48 = vld [vmem:[%s7196_s3 + $0x90] ss:$8 sps:$4 sm:$0xff]   ;;  %v5222_v53 = vld [vmem:[%s7196_s3 + $0x1a4] ss:$8 sps:$4 sm:$0xff]   ;;  %v5235_v43 = vld [vmem:[%s7196_s3 + $0xc0] ss:$8 sps:$4 sm:$0xff]  }
  0xaa   : > { %v790_v19 = vsel %vm784_vm1, %v768_v15, %v748_v16  ;;  %v5249_v15 = vld [vmem:[%s7196_s3 + $0xe4] ss:$8 sps:$4 sm:$0xff]   ;;  %v5247_v16 = vld [vmem:[%s7196_s3 + $0xe0] ss:$8 sps:$4 sm:$0xff]  }
  0xac   : > { %2738 = vmatpush1.bf16.msra.mxu0 %v5166_v1  ;;  %2665 = vmatpush1.bf16.msra.mxu1 %v5169_v3  ;;  %v724_v47 = vpop.permute.xlu0 %723  ;;  %v5220_v1 = vld [vmem:[%s7196_s3 + $0x1a0] ss:$8 sps:$4 sm:$0xff]  }
  0xad   : > { %2739 = vmatprep.subr.bf16.mxu0 %v5174_v4  ;;  %2666 = vmatprep.subr.bf16.mxu1 %v5177_v5  ;;  %v771_v24 = vsel %vm759_vm0, %v4320_v51, %v724_v47  ;;  %v750_v25 = vpop.permute.xlu1 %749  ;;  %v5223_v3 = vld [vmem:[%s7196_s3 + $0xa0] ss:$8 sps:$4 sm:$0xff]   ;;  %v5226_v5 = vld [vmem:[%s7196_s3 + $0x1b0] ss:$8 sps:$4 sm:$0xff]   ;;  %v827_v47 = vlaneseq }
  0xae   : > { %4366 = vmatmul.mubr.msk.bf16.gmra.mrb[4].mxu0 %vm967_vm2, %v788_v10  ;;  %4374 = vmatmul.mubr.msk.bf16.gmra.mrb[4].mxu1 %vm967_vm2, %v788_v10  ;;  %v792_v28 = vsel %vm784_vm1, %v771_v24, %v750_v25 }
  0xaf   : > { %1036 = vmatprep.mubr.bf16.mxu0 %v5560_v33  ;;  %1149 = vmatprep.mubr.bf16.mxu1 %v5560_v33 }
  0xb0   : > { %2740 = vmatpush1.bf16.msra.mxu0 %v5172_v8  ;;  %2667 = vmatpush1.bf16.msra.mxu1 %v5175_v9  ;;  %v726_v51 = vpop.permute.xlu0 %725  ;;  %v5237_v8 = vld [vmem:[%s7196_s3 + $0xc4] ss:$8 sps:$4 sm:$0xff]  }
  0xb1   : > { %2741 = vmatprep.subr.bf16.mxu0 %v5180_v38  ;;  %2668 = vmatprep.subr.bf16.mxu1 %v5183_v41  ;;  %v774_v34 = vsel %vm759_vm0, %v4321_v54, %v726_v51  ;;  %v752_v35 = vpop.permute.xlu1 %751  ;;  %v5232_v41 = vld [vmem:[%s7196_s3 + $0x1c0] ss:$8 sps:$4 sm:$0xff]  }
  0xb2   : > { %v794_v40 = vsel %vm784_vm1, %v774_v34, %v752_v35 }
  0xb4   : > { %2742 = vmatpush1.bf16.msra.mxu0 %v5178_v11  ;;  %2669 = vmatpush1.bf16.msra.mxu1 %v5181_v12  ;;  %v728_v54 = vpop.permute.xlu0 %727  ;;  %v5240_v12 = vld [vmem:[%s7196_s3 + $0x1d4] ss:$8 sps:$4 sm:$0xff]  }
  0xb5   : > { %2743 = vmatprep.subr.bf16.mxu0 %v5186_v13  ;;  %2670 = vmatprep.subr.bf16.mxu1 %v5189_v14  ;;  %v777_v57 = vsel %vm759_vm0, %v4322_v58, %v728_v54  ;;  %v754_v61 = vpop.permute.xlu1 %753  ;;  %v5238_v13 = vld [vmem:[%s7196_s3 + $0x1d0] ss:$8 sps:$4 sm:$0xff]   ;;  %v5244_v14 = vld [vmem:[%s7196_s3 + $0x1e0] ss:$8 sps:$4 sm:$0xff]  }
  0xb6   : > { %4367 = vmatmul.mubr.msk.bf16.gmra.mrb[8].mxu0 %vm967_vm2, %v790_v19  ;;  %4375 = vmatmul.mubr.msk.bf16.gmra.mrb[8].mxu1 %vm967_vm2, %v790_v19  ;;  %v796_v4 = vsel %vm784_vm1, %v777_v57, %v754_v61  ;;  %v5255_v19 = vld [vmem:[%s7196_s3 + $0xf4] ss:$8 sps:$4 sm:$0xff]  }
  0xb7   : > { %1046 = vmatprep.mubr.bf16.mxu0 %v5560_v33  ;;  %1159 = vmatprep.mubr.bf16.mxu1 %v5560_v33 }
  0xb8   : > { %2744 = vmatpush1.bf16.msra.mxu0 %v5184_v17  ;;  %2671 = vmatpush1.bf16.msra.mxu1 %v5187_v18  ;;  %v730_v58 = vpop.permute.xlu0 %729  ;;  %v5252_v17 = vld [vmem:[%s7196_s3 + $0x1f4] ss:$8 sps:$4 sm:$0xff]   ;;  %v5250_v18 = vld [vmem:[%s7196_s3 + $0x1f0] ss:$8 sps:$4 sm:$0xff]  }
  0xb9   : > { %2745 = vmatprep.subr.bf16.mxu0 %v5192_v42  ;;  %2672 = vmatprep.subr.bf16.mxu1 %v5195_v45  ;;  %v780_v9 = vsel %vm759_vm0, %v4323_v63, %v730_v58  ;;  %v756_v10 = vpop.permute.xlu1 %755  ;;  %v5253_v42 = vld [vmem:[%s7196_s3 + $0xf0] ss:$8 sps:$4 sm:$0xff]   ;;  %v5258_v45 = vld [vmem:[%s7196_s3 + $0x204] ss:$8 sps:$4 sm:$0xff]  }
  0xba   : > { %v798_v38 = vsel %vm784_vm1, %v780_v9, %v756_v10  ;;  %v6209_v9 = vunpack.c.l.b16 %v5560_v33 }
  0xbc   : > { %2746 = vmatpush1.bf16.msra.mxu0 %v5190_v20  ;;  %2673 = vmatpush1.bf16.msra.mxu1 %v5193_v21  ;;  %v732_v59 = vpop.permute.xlu0 %731  ;;  %v6179_v20 = vshrl.u32 %v827_v47, 7 }
  0xbd   : > { %2747 = vmatprep.subr.bf16.mxu0 %v5198_v22  ;;  %2674 = vmatprep.subr.bf16.mxu1 %v5201_v23  ;;  %v783_v60 = vsel %vm759_vm0, %v4324_v2, %v732_v59  ;;  %v758_v63 = vpop.permute.xlu1 %757  ;;  %v5246_v2 = vld [vmem:[%s7196_s3 + $0x1e4] ss:$8 sps:$4 sm:$0xff]   ;;  %v825_v23 = vld [vmem:[%s7195_s2] sm:$0xf] }
  0xbe   : > { %4368 = vmatmul.mubr.msk.bf16.gmra.mrb[12].mxu0 %vm967_vm2, %v792_v28  ;;  %4376 = vmatmul.mubr.msk.bf16.gmra.mrb[12].mxu1 %vm967_vm2, %v792_v28  ;;  %v800_v11 = vsel %vm784_vm1, %v783_v60, %v758_v63  ;;  %v829_v21 = vsub.s32 0, %v6179_v20  ;;  %v837_v22 = vsub.s32 2, %v6179_v20  ;;  %v833_v24 = vsub.s32 1, %v6179_v20 }
  0xbf   : > { %1056 = vmatprep.mubr.bf16.mxu0 %v5560_v33  ;;  %1169 = vmatprep.mubr.bf16.mxu1 %v5560_v33  ;;  %v841_v25 = vsub.s32 3, %v6179_v20  ;;  %v5458_v20 = vld [vmem:[%s7198_s5 + $0x68] sm:$0xff]  }
  0xc0   : > { %2748 = vmatpush1.bf16.msra.mxu0 %v5196_v26  ;;  %2675 = vmatpush1.bf16.msra.mxu1 %v5199_v27  ;;  %v6190_v26 = vrot.slane %v825_v23, %v829_v21  ;;  %v6192_v27 = vrot.slane %v825_v23, %v837_v22  ;;  %v6196_v28 = vrot.slane %v825_v23, %v833_v24 }
  0xc1   : > { %2749 = vmatprep.subr.bf16.mxu0 %v5204_v46  ;;  %2676 = vmatprep.subr.bf16.mxu1 %v5207_v49  ;;  %v6198_v46 = vrot.slane %v825_v23, %v841_v25 }
  0xc4   : > { %2750 = vmatpush1.bf16.msra.mxu0 %v5202_v29  ;;  %2677 = vmatpush1.bf16.msra.mxu1 %v5205_v30 }
  0xc5   : > { %2751 = vmatprep.subr.bf16.mxu0 %v5210_v31  ;;  %2678 = vmatprep.subr.bf16.mxu1 %v5213_v32 }
  0xc6   : > { %4369 = vmatmul.mubr.msk.bf16.gmra.mrb[16].mxu0 %vm967_vm2, %v794_v40  ;;  %4377 = vmatmul.mubr.msk.bf16.gmra.mrb[16].mxu1 %vm967_vm2, %v794_v40 }
  0xc7   : > { %1066 = vmatprep.mubr.bf16.mxu0 %v5560_v33  ;;  %1179 = vmatprep.mubr.bf16.mxu1 %v5560_v33 }
  0xc8   : > { %2752 = vmatpush1.bf16.msra.mxu0 %v5208_v36  ;;  %2679 = vmatpush1.bf16.msra.mxu1 %v5211_v39 }
  0xc9   : > { %2753 = vmatprep.subr.bf16.mxu0 %v5216_v50  ;;  %2680 = vmatprep.subr.bf16.mxu1 %v5219_v52 }
  0xcc   : > { %2754 = vmatpush1.bf16.msra.mxu0 %v5214_v44  ;;  %2681 = vmatpush1.bf16.msra.mxu1 %v5217_v48 }
  0xcd   : > { %2755 = vmatprep.subr.bf16.mxu0 %v5222_v53  ;;  %2682 = vmatprep.subr.bf16.mxu1 %v5225_v37 }
  0xce   : > { %4370 = vmatmul.mubr.msk.bf16.gmra.mrb[20].mxu0 %vm967_vm2, %v796_v4  ;;  %4378 = vmatmul.mubr.msk.bf16.gmra.mrb[20].mxu1 %vm967_vm2, %v796_v4 }
  0xcf   : > { %1076 = vmatprep.mubr.bf16.mxu0 %v5560_v33  ;;  %1189 = vmatprep.mubr.bf16.mxu1 %v5560_v33 }
  0xd0   : > { %2756 = vmatpush1.bf16.msra.mxu0 %v5220_v1  ;;  %2683 = vmatpush1.bf16.msra.mxu1 %v5223_v3 }
  0xd1   : > { %2757 = vmatprep.subr.bf16.mxu0 %v5228_v55  ;;  %2684 = vmatprep.subr.bf16.mxu1 %v5231_v56 }
  0xd4   : > { %2758 = vmatpush1.bf16.msra.mxu0 %v5226_v5  ;;  %2685 = vmatpush1.bf16.msra.mxu1 %v5229_v6 }
  0xd5   : > { %2759 = vmatprep.subr.bf16.mxu0 %v5234_v7  ;;  %2686 = vmatprep.subr.bf16.mxu1 %v5237_v8 }
  0xd6   : > { %4371 = vmatmul.mubr.msk.bf16.gmra.mrb[24].mxu0 %vm967_vm2, %v798_v38  ;;  %4379 = vmatmul.mubr.msk.bf16.gmra.mrb[24].mxu1 %vm967_vm2, %v798_v38 }
  0xd7   : > { %1086 = vmatprep.mubr.bf16.mxu0 %v5560_v33  ;;  %1199 = vmatprep.mubr.bf16.mxu1 %v5560_v33 }
  0xd8   : > { %2760 = vmatpush1.bf16.msra.mxu0 %v5232_v41  ;;  %2687 = vmatpush1.bf16.msra.mxu1 %v5235_v43 }
  0xd9   : > { %2761 = vmatprep.subr.bf16.mxu0 %v5240_v12  ;;  %2688 = vmatprep.subr.bf16.mxu1 %v5243_v62 }
  0xdc   : > { %2762 = vmatpush1.bf16.msra.mxu0 %v5238_v13  ;;  %2689 = vmatpush1.bf16.msra.mxu1 %v5241_v0 }
  0xdd   : > { %2763 = vmatprep.subr.bf16.mxu0 %v5246_v2  ;;  %2690 = vmatprep.subr.bf16.mxu1 %v5249_v15 }
  0xde   : > { %4372 = vmatmul.mubr.msk.bf16.gmra.mrb[28].mxu0 %vm967_vm2, %v800_v11  ;;  %4380 = vmatmul.mubr.msk.bf16.gmra.mrb[28].mxu1 %vm967_vm2, %v800_v11 }
  0xe0   : > { %2764 = vmatpush1.bf16.msra.mxu0 %v5244_v14  ;;  %2691 = vmatpush1.bf16.msra.mxu1 %v5247_v16 }
  0xe1   : > { %2765 = vmatprep.subr.bf16.mxu0 %v5252_v17  ;;  %2692 = vmatprep.subr.bf16.mxu1 %v5255_v19 }
  0xe4   : > { %2766 = vmatpush1.bf16.msra.mxu0 %v5250_v18  ;;  %2693 = vmatpush1.bf16.msra.mxu1 %v5253_v42 }
  0xe5   : > { %2808 = vmatprep.subr.bf16.mxu0 %v5258_v45 }
 0x179   : > { %v1018_v49 = vpop.f32.mrb[0].mxu0  ;;  %v1131_v51 = vpop.f32.mrb[0].mxu1 }
 0x17a   : > { %v1019_v29 = vadd.f32 %v1018_v49, %v6190_v26  ;;  %v1132_v30 = vadd.f32 %v1131_v51, %v6192_v27  ;;  %v1020_v31 = vpop.f32.mrb[1].mxu0  ;;  %v1133_v32 = vpop.f32.mrb[1].mxu1 }
 0x17b   : > { %v1021_v34 = vadd.f32 %v1020_v31, %v6196_v28  ;;  %v1134_v35 = vadd.f32 %v1133_v32, %v6198_v46  ;;  %v1022_v36 = vpop.f32.mrb[2].mxu0  ;;  %v1135_v39 = vpop.f32.mrb[2].mxu1 }
 0x17c   : > { %v1023_v40 = vadd.f32 %v1022_v36, %v6190_v26  ;;  %v1136_v50 = vadd.f32 %v1135_v39, %v6192_v27  ;;  %v1024_v52 = vpop.f32.mrb[3].mxu0  ;;  %v1137_v54 = vpop.f32.mrb[3].mxu1  ;;  %v1210_v53 = vmax.f32 %v1019_v29, 0.0  ;;  %v1212_v37 = vmax.f32 %v1132_v30, 0.0 }
 0x17d   : > { %v1025_v44 = vadd.f32 %v1024_v52, %v6196_v28  ;;  %v1138_v48 = vadd.f32 %v1137_v54, %v6198_v46  ;;  %v1211_v1 = vmax.f32 %v1021_v34, 0.0  ;;  %v1213_v3 = vmax.f32 %v1134_v35, 0.0  ;;  %v5256_v34 = vld [vmem:[%s7196_s3 + $0x200] ss:$8 sps:$4 sm:$0xff]   ;;  %v5261_v54 = vld [vmem:[%s7196_s3 + $0x214] ss:$8 sps:$4 sm:$0xff]  }
 0x17e   : > { %v1214_v57 = vmax.f32 %v1023_v40, 0.0  ;;  %v1216_v61 = vmax.f32 %v1136_v50, 0.0 }
 0x17f   : > { %v1215_v4 = vmax.f32 %v1025_v44, 0.0  ;;  %v1217_v55 = vmax.f32 %v1138_v48, 0.0 }
 0x180   : > { %v1274_v56 = vpack.c.bf16 %v1214_v57, %v1210_v53  ;;  %v1276_v58 = vpack.c.bf16 %v1216_v61, %v1212_v37 }
 0x181   : > { %v1275_v5 = vpack.c.bf16 %v1215_v4, %v1211_v1  ;;  %v1277_v6 = vpack.c.bf16 %v1217_v55, %v1213_v3  ;;  %v1028_v7 = vpop.f32.mrb[4].mxu0  ;;  %v1141_v8 = vpop.f32.mrb[4].mxu1 }
 0x182   : > { %v1029_v10 = vadd.f32 %v1028_v7, %v6190_v26  ;;  %v1142_v38 = vadd.f32 %v1141_v8, %v6192_v27  ;;  %v1030_v41 = vpop.f32.mrb[5].mxu0  ;;  %v1143_v43 = vpop.f32.mrb[5].mxu1  ;;  %v1342_v59 = vunpack.c.h.b16 %v1274_v56  ;;  %v1344_v60 = vunpack.c.h.b16 %v1276_v58 }
 0x183   : > { %v1031_v63 = vadd.f32 %v1030_v41, %v6196_v28  ;;  %v1144_v11 = vadd.f32 %v1143_v43, %v6198_v46  ;;  %v1032_v12 = vpop.f32.mrb[6].mxu0  ;;  %v1145_v13 = vpop.f32.mrb[6].mxu1  ;;  %v1343_v62 = vunpack.c.h.b16 %v1275_v5  ;;  %v1345_v0 = vunpack.c.h.b16 %v1277_v6  ;;  %v5259_v5 = vld [vmem:[%s7196_s3 + $0x210] ss:$8 sps:$4 sm:$0xff]  }
 0x184   : > { %v1218_v2 = vmax.f32 %v1029_v10, 0.0  ;;  %v1220_v14 = vmax.f32 %v1142_v38, 0.0  ;;  %v1034_v33 = vpop.f32.mrb[7].mxu0  ;;  %v1147_v15 = vpop.f32.mrb[7].mxu1  ;;  %v1033_v18 = vadd.f32 %v1032_v12, %v6190_v26  ;;  %v1146_v19 = vadd.f32 %v1145_v13, %v6192_v27  ;;  %v5264_v10 = vld [vmem:[%s7196_s3 + $0x224] ss:$8 sps:$4 sm:$0xff]  }
 0x185   : > { %v1219_v16 = vmax.f32 %v1031_v63, 0.0  ;;  %v1221_v17 = vmax.f32 %v1144_v11, 0.0  ;;  %v1035_v47 = vadd.f32 %v1034_v33, %v6196_v28  ;;  %v1148_v22 = vadd.f32 %v1147_v15, %v6198_v46  ;;  %v5262_v12 = vld [vmem:[%s7196_s3 + $0x220] ss:$8 sps:$4 sm:$0xff]  }
 0x186   : > { %v6217_v42 = vpack.c.bf16 %v1218_v2, %v1210_v53  ;;  %v6219_v45 = vpack.c.bf16 %v1220_v14, %v1212_v37  ;;  %v1222_v49 = vmax.f32 %v1033_v18, 0.0  ;;  %v1224_v51 = vmax.f32 %v1146_v19, 0.0  ;;  %v5267_v14 = vld [vmem:[%s7196_s3 + $0x234] ss:$8 sps:$4 sm:$0xff]  }
 0x187   : > { %v6223_v23 = vpack.c.bf16 %v1219_v16, %v1211_v1  ;;  %v6225_v25 = vpack.c.bf16 %v1221_v17, %v1213_v3  ;;  %v1223_v29 = vmax.f32 %v1035_v47, 0.0  ;;  %v1225_v30 = vmax.f32 %v1148_v22, 0.0 }
 0x188   : > { %v1403_v31 = vpack.c.b16 %v1343_v62, %v6209_v9  ;;  %v1405_v32 = vpack.c.b16 %v1345_v0, %v6209_v9  ;;  %v1402_v35 = vpack.c.b16 %v1342_v59, %v6209_v9  ;;  %v1404_v36 = vpack.c.b16 %v1344_v60, %v6209_v9 }
 0x189   : > { %v6234_v39 = vpack.c.bf16 %v1222_v49, %v1214_v57  ;;  %v6236_v40 = vpack.c.bf16 %v1224_v51, %v1216_v61  ;;  %v1038_v50 = vpop.f32.mrb[8].mxu0  ;;  %v1151_v52 = vpop.f32.mrb[8].mxu1  ;;  %v6241_v44 = vpack.c.bf16 %v1223_v29, %v1215_v4  ;;  %v6243_v48 = vpack.c.bf16 %v1225_v30, %v1217_v55 }
 0x18a   : > { %2694 = vmatprep.mubr.bf16.mxu1 %v1403_v31  ;;  %2767 = vmatprep.mubr.bf16.mxu0 %v1405_v32  ;;  %v6246_v53 = vadd.f32 %v1038_v50, %v6190_v26  ;;  %v1040_v37 = vpop.f32.mrb[9].mxu0  ;;  %v1153_v57 = vpop.f32.mrb[9].mxu1  ;;  %v1152_v61 = vadd.f32 %v1151_v52, %v6192_v27 }
 0x18b   : > { %2695 = vmatmul.mubr.bf16.vlgmr.msra.gmra.mrb[32].mxu1 %v1402_v35  ;;  %2768 = vmatmul.mubr.bf16.vlgmr.msra.gmra.mrb[32].mxu0 %v1404_v36  ;;  %v6250_v1 = vadd.f32 %v1040_v37, %v6196_v28  ;;  %v6253_v3 = vadd.f32 %v1153_v57, %v6198_v46  ;;  %v1042_v4 = vpop.f32.mrb[10].mxu0  ;;  %v1155_v55 = vpop.f32.mrb[10].mxu1 }
 0x18c   : > { %2809 = vmatpush1.bf16.msra.mxu0 %v5256_v34  ;;  %v1043_v56 = vadd.f32 %v1042_v4, %v6190_v26  ;;  %v1156_v58 = vadd.f32 %v1155_v55, %v6192_v27  ;;  %v1044_v6 = vpop.f32.mrb[11].mxu0  ;;  %v1157_v7 = vpop.f32.mrb[11].mxu1  ;;  %v1226_v13 = vmax.f32 %v6246_v53, 0.0  ;;  %v1228_v33 = vmax.f32 %v1152_v61, 0.0  ;;  %v5265_v34 = vld [vmem:[%s7196_s3 + $0x230] ss:$8 sps:$4 sm:$0xff]  }
 0x18d   : > { %2810 = vmatprep.subr.bf16.mxu0 %v5261_v54  ;;  %v1045_v8 = vadd.f32 %v1044_v6, %v6196_v28  ;;  %v1158_v43 = vadd.f32 %v1157_v7, %v6198_v46  ;;  %v1227_v47 = vmax.f32 %v6250_v1, 0.0  ;;  %v1229_v22 = vmax.f32 %v6253_v3, 0.0  ;;  %v5270_v61 = vld [vmem:[%s7196_s3 + $0x244] ss:$8 sps:$4 sm:$0xff]  }
 0x18e   : > { %v1230_v38 = vmax.f32 %v1043_v56, 0.0  ;;  %v1232_v41 = vmax.f32 %v1156_v58, 0.0 }
 0x18f   : > { %v1231_v59 = vmax.f32 %v1045_v8, 0.0  ;;  %v1233_v11 = vmax.f32 %v1158_v43, 0.0 }
 0x190   : > { %v4725_v60 = vpack.c.bf16 %v1230_v38, %v1222_v49  ;;  %v4727_v63 = vpack.c.bf16 %v1232_v41, %v1224_v51  ;;  %2811 = vmatpush1.bf16.msra.mxu0 %v5259_v5 }
 0x191   : > { %v4726_v62 = vpack.c.bf16 %v1231_v59, %v1223_v29  ;;  %2812 = vmatprep.subr.bf16.mxu0 %v5264_v10  ;;  %v1048_v0 = vpop.f32.mrb[12].mxu0  ;;  %v1161_v2 = vpop.f32.mrb[12].mxu1  ;;  %v4728_v15 = vpack.c.bf16 %v1233_v11, %v1225_v30  ;;  %v5268_v10 = vld [vmem:[%s7196_s3 + $0x240] ss:$8 sps:$4 sm:$0xff]  }
 0x192   : > { %v1049_v16 = vadd.f32 %v1048_v0, %v6190_v26  ;;  %v1162_v17 = vadd.f32 %v1161_v2, %v6192_v27  ;;  %v1050_v18 = vpop.f32.mrb[13].mxu0  ;;  %v1163_v19 = vpop.f32.mrb[13].mxu1 }
 0x193   : > { %v1051_v49 = vadd.f32 %v1050_v18, %v6196_v28  ;;  %v1164_v51 = vadd.f32 %v1163_v19, %v6198_v46  ;;  %2704 = vmatprep.mubr.bf16.mxu1 %v4726_v62  ;;  %v1052_v29 = vpop.f32.mrb[14].mxu0  ;;  %v1165_v31 = vpop.f32.mrb[14].mxu1  ;;  %2777 = vmatprep.mubr.bf16.mxu0 %v4728_v15 }
 0x194   : > { %2813 = vmatpush1.bf16.msra.mxu0 %v5262_v12  ;;  %v1234_v32 = vmax.f32 %v1049_v16, 0.0  ;;  %v1236_v30 = vmax.f32 %v1162_v17, 0.0  ;;  %v1053_v35 = vadd.f32 %v1052_v29, %v6190_v26  ;;  %v1166_v36 = vadd.f32 %v1165_v31, %v6192_v27  ;;  %v1054_v50 = vpop.f32.mrb[15].mxu0  ;;  %v1167_v52 = vpop.f32.mrb[15].mxu1  ;;  %2705 = vmatmul.mubr.bf16.gmra.mrb[36].mxu1 %v4725_v60  ;;  %v5271_v16 = vld [vmem:[%s7196_s3 + $0x250] ss:$8 sps:$4 sm:$0xff]  }
 0x195   : > { %v1235_v54 = vmax.f32 %v1051_v49, 0.0  ;;  %v1237_v53 = vmax.f32 %v1164_v51, 0.0  ;;  %2814 = vmatprep.subr.bf16.mxu0 %v5267_v14  ;;  %v1055_v37 = vadd.f32 %v1054_v50, %v6196_v28  ;;  %v1168_v57 = vadd.f32 %v1167_v52, %v6198_v46  ;;  %2778 = vmatmul.mubr.bf16.gmra.mrb[36].mxu0 %v4727_v63 }
 0x196   : > { %v6288_v1 = vpack.c.bf16 %v1234_v32, %v1226_v13  ;;  %v6290_v3 = vpack.c.bf16 %v1236_v30, %v1228_v33  ;;  %v1238_v4 = vmax.f32 %v1053_v35, 0.0  ;;  %v1240_v55 = vmax.f32 %v1166_v36, 0.0  ;;  %v5273_v13 = vld [vmem:[%s7196_s3 + $0x254] ss:$8 sps:$4 sm:$0xff]  }
 0x197   : > { %v6292_v56 = vpack.c.bf16 %v1235_v54, %v1227_v47  ;;  %v6294_v58 = vpack.c.bf16 %v1237_v53, %v1229_v22  ;;  %v1239_v5 = vmax.f32 %v1055_v37, 0.0  ;;  %v1241_v6 = vmax.f32 %v1168_v57, 0.0  ;;  %v5276_v22 = vld [vmem:[%s7196_s3 + $0x264] ss:$8 sps:$4 sm:$0xff]   ;;  %v5279_v54 = vld [vmem:[%s7196_s3 + $0x274] ss:$8 sps:$4 sm:$0xff]  }
 0x198   : > { %v6296_v7 = vpack.c.bf16 %v1238_v4, %v1230_v38  ;;  %v6298_v8 = vpack.c.bf16 %v1240_v55, %v1232_v41  ;;  %2815 = vmatpush1.bf16.msra.mxu0 %v5265_v34  ;;  %v5274_v34 = vld [vmem:[%s7196_s3 + $0x260] ss:$8 sps:$4 sm:$0xff]  }
 0x199   : > { %v6303_v43 = vpack.c.bf16 %v1239_v5, %v1231_v59  ;;  %v6305_v60 = vpack.c.bf16 %v1241_v6, %v1233_v11  ;;  %2816 = vmatprep.subr.bf16.mxu0 %v5270_v61  ;;  %v1058_v63 = vpop.f32.mrb[16].mxu0  ;;  %v1171_v12 = vpop.f32.mrb[16].mxu1 }
 0x19a   : > { %v6311_v38 = vadd.f32 %v1058_v63, %v6190_v26  ;;  %v6314_v41 = vadd.f32 %v1171_v12, %v6192_v27  ;;  %v1060_v62 = vpop.f32.mrb[17].mxu0  ;;  %v1173_v0 = vpop.f32.mrb[17].mxu1 }
 0x19b   : > { %v6317_v59 = vadd.f32 %v1060_v62, %v6196_v28  ;;  %v6320_v11 = vadd.f32 %v1173_v0, %v6198_v46  ;;  %v1062_v2 = vpop.f32.mrb[18].mxu0  ;;  %v1175_v14 = vpop.f32.mrb[18].mxu1  ;;  %v5277_v62 = vld [vmem:[%s7196_s3 + $0x270] ss:$8 sps:$4 sm:$0xff]  }
 0x19c   : > { %2817 = vmatpush1.bf16.msra.mxu0 %v5268_v10  ;;  %v1063_v33 = vadd.f32 %v1062_v2, %v6190_v26  ;;  %v1176_v15 = vadd.f32 %v1175_v14, %v6192_v27  ;;  %v1064_v17 = vpop.f32.mrb[19].mxu0  ;;  %v1177_v18 = vpop.f32.mrb[19].mxu1  ;;  %v1242_v53 = vmax.f32 %v6311_v38, 0.0  ;;  %v1244_v37 = vmax.f32 %v6314_v41, 0.0 }
 0x19d   : > { %2818 = vmatprep.subr.bf16.mxu0 %v5273_v13  ;;  %v1065_v19 = vadd.f32 %v1064_v17, %v6196_v28  ;;  %v1178_v47 = vadd.f32 %v1177_v18, %v6198_v46  ;;  %v5282_v17 = vld [vmem:[%s7196_s3 + $0x284] ss:$8 sps:$4 sm:$0xff]  }
 0x19e   : > { %v1246_v49 = vmax.f32 %v1063_v33, 0.0  ;;  %v1248_v51 = vmax.f32 %v1176_v15, 0.0 }
 0x19f   : > { %v1247_v29 = vmax.f32 %v1065_v19, 0.0  ;;  %v1249_v31 = vmax.f32 %v1178_v47, 0.0 }
 0x1a0   : > { %v4729_v32 = vpack.c.bf16 %v1246_v49, %v1238_v4  ;;  %v4731_v30 = vpack.c.bf16 %v1248_v51, %v1240_v55  ;;  %2819 = vmatpush1.bf16.msra.mxu0 %v5271_v16 }
 0x1a1   : > { %v4730_v35 = vpack.c.bf16 %v1247_v29, %v1239_v5  ;;  %v4732_v36 = vpack.c.bf16 %v1249_v31, %v1241_v6  ;;  %2820 = vmatprep.subr.bf16.mxu0 %v5276_v22  ;;  %v1068_v50 = vpop.f32.mrb[20].mxu0  ;;  %v1181_v52 = vpop.f32.mrb[20].mxu1  ;;  %v1243_v5 = vmax.f32 %v6317_v59, 0.0  ;;  %v1245_v6 = vmax.f32 %v6320_v11, 0.0 }
 0x1a2   : > { %v1069_v57 = vadd.f32 %v1068_v50, %v6190_v26  ;;  %v1182_v61 = vadd.f32 %v1181_v52, %v6192_v27  ;;  %v1070_v4 = vpop.f32.mrb[21].mxu0  ;;  %v1183_v55 = vpop.f32.mrb[21].mxu1  ;;  %v5280_v52 = vld [vmem:[%s7196_s3 + $0x280] ss:$8 sps:$4 sm:$0xff]  }
 0x1a3   : > { %v1071_v10 = vadd.f32 %v1070_v4, %v6196_v28  ;;  %v1184_v63 = vadd.f32 %v1183_v55, %v6198_v46  ;;  %2714 = vmatprep.mubr.bf16.mxu1 %v4730_v35  ;;  %2787 = vmatprep.mubr.bf16.mxu0 %v4732_v36  ;;  %v1072_v12 = vpop.f32.mrb[22].mxu0  ;;  %v1185_v13 = vpop.f32.mrb[22].mxu1 }
 0x1a4   : > { %2821 = vmatpush1.bf16.msra.mxu0 %v5274_v34  ;;  %v1250_v38 = vmax.f32 %v1069_v57, 0.0  ;;  %v1252_v41 = vmax.f32 %v1182_v61, 0.0  ;;  %v1073_v0 = vadd.f32 %v1072_v12, %v6190_v26  ;;  %v1186_v59 = vadd.f32 %v1185_v13, %v6192_v27  ;;  %2715 = vmatmul.mubr.bf16.gmra.mrb[40].mxu1 %v4729_v32  ;;  %v1074_v11 = vpop.f32.mrb[23].mxu0  ;;  %v1187_v2 = vpop.f32.mrb[23].mxu1  ;;  %v5285_v61 = vld [vmem:[%s7196_s3 + $0x294] ss:$8 sps:$4 sm:$0xff]  }
 0x1a5   : > { %v1251_v14 = vmax.f32 %v1071_v10, 0.0  ;;  %v1253_v33 = vmax.f32 %v1184_v63, 0.0  ;;  %2822 = vmatprep.subr.bf16.mxu0 %v5279_v54  ;;  %2788 = vmatmul.mubr.bf16.gmra.mrb[40].mxu0 %v4731_v30  ;;  %v1075_v15 = vadd.f32 %v1074_v11, %v6196_v28  ;;  %v1188_v16 = vadd.f32 %v1187_v2, %v6198_v46  ;;  %v5283_v12 = vld [vmem:[%s7196_s3 + $0x290] ss:$8 sps:$4 sm:$0xff]  }
 0x1a6   : > { %v6356_v18 = vpack.c.bf16 %v1250_v38, %v1242_v53  ;;  %v6358_v19 = vpack.c.bf16 %v1252_v41, %v1244_v37  ;;  %v1254_v47 = vmax.f32 %v1073_v0, 0.0  ;;  %v1256_v22 = vmax.f32 %v1186_v59, 0.0  ;;  %v5288_v0 = vld [vmem:[%s7196_s3 + $0x2a4] ss:$8 sps:$4 sm:$0xff]  }
 0x1a7   : > { %v6360_v32 = vpack.c.bf16 %v1251_v14, %v1243_v5  ;;  %v6362_v34 = vpack.c.bf16 %v1253_v33, %v1245_v6  ;;  %v1255_v35 = vmax.f32 %v1075_v15, 0.0  ;;  %v1257_v30 = vmax.f32 %v1188_v16, 0.0  ;;  %v5286_v16 = vld [vmem:[%s7196_s3 + $0x2a0] ss:$8 sps:$4 sm:$0xff]  }
 0x1a8   : > { %v6364_v36 = vpack.c.bf16 %v1254_v47, %v1246_v49  ;;  %v6366_v50 = vpack.c.bf16 %v1256_v22, %v1248_v51  ;;  %2823 = vmatpush1.bf16.msra.mxu0 %v5277_v62 }
 0x1a9   : > { %v6371_v54 = vpack.c.bf16 %v1255_v35, %v1247_v29  ;;  %v6373_v53 = vpack.c.bf16 %v1257_v30, %v1249_v31  ;;  %2824 = vmatprep.subr.bf16.mxu0 %v5282_v17  ;;  %v1078_v37 = vpop.f32.mrb[24].mxu0  ;;  %v1191_v57 = vpop.f32.mrb[24].mxu1 }
 0x1aa   : > { %v6379_v49 = vadd.f32 %v1078_v37, %v6190_v26  ;;  %v6382_v51 = vadd.f32 %v1191_v57, %v6192_v27  ;;  %v1080_v4 = vpop.f32.mrb[25].mxu0  ;;  %v1193_v55 = vpop.f32.mrb[25].mxu1 }
 0x1ab   : > { %v6385_v29 = vadd.f32 %v1080_v4, %v6196_v28  ;;  %v6388_v31 = vadd.f32 %v1193_v55, %v6198_v46  ;;  %v1082_v5 = vpop.f32.mrb[26].mxu0  ;;  %v1195_v6 = vpop.f32.mrb[26].mxu1 }
 0x1ac   : > { %2825 = vmatpush1.bf16.msra.mxu0 %v5280_v52  ;;  %v6391_v10 = vadd.f32 %v1082_v5, %v6190_v26  ;;  %v6394_v63 = vadd.f32 %v1195_v6, %v6192_v27  ;;  %v1084_v13 = vpop.f32.mrb[27].mxu0  ;;  %v1197_v38 = vpop.f32.mrb[27].mxu1  ;;  %v1258_v4 = vmax.f32 %v6379_v49, 0.0  ;;  %v1260_v55 = vmax.f32 %v6382_v51, 0.0 }
 0x1ad   : > { %2826 = vmatprep.subr.bf16.mxu0 %v5285_v61  ;;  %v1085_v41 = vadd.f32 %v1084_v13, %v6196_v28  ;;  %v1198_v62 = vadd.f32 %v1197_v38, %v6198_v46  ;;  %v5291_v61 = vld [vmem:[%s7196_s3 + $0x2b4] ss:$8 sps:$4 sm:$0xff]   ;;  %v5289_v38 = vld [vmem:[%s7196_s3 + $0x2b0] ss:$8 sps:$4 sm:$0xff]  }
 0x1ae   : > { %v1262_v59 = vmax.f32 %v6391_v10, 0.0  ;;  %v1264_v11 = vmax.f32 %v6394_v63, 0.0 }
 0x1af   : > { %v1263_v2 = vmax.f32 %v1085_v41, 0.0  ;;  %v1265_v14 = vmax.f32 %v1198_v62, 0.0 }
 0x1b0   : > { %v4733_v33 = vpack.c.bf16 %v1262_v59, %v1254_v47  ;;  %v4735_v15 = vpack.c.bf16 %v1264_v11, %v1256_v22  ;;  %2827 = vmatpush1.bf16.msra.mxu0 %v5283_v12 }
 0x1b1   : > { %v4734_v17 = vpack.c.bf16 %v1263_v2, %v1255_v35  ;;  %v4736_v52 = vpack.c.bf16 %v1265_v14, %v1257_v30  ;;  %2828 = vmatprep.subr.bf16.mxu0 %v5288_v0  ;;  %v1088_v37 = vpop.f32.mrb[28].mxu0  ;;  %v1201_v57 = vpop.f32.mrb[28].mxu1  ;;  %v1259_v35 = vmax.f32 %v6385_v29, 0.0  ;;  %v1261_v30 = vmax.f32 %v6388_v31, 0.0 }
 0x1b2   : > { %v1089_v47 = vadd.f32 %v1088_v37, %v6190_v26  ;;  %v1202_v22 = vadd.f32 %v1201_v57, %v6192_v27  ;;  %v1090_v5 = vpop.f32.mrb[29].mxu0  ;;  %v1203_v6 = vpop.f32.mrb[29].mxu1 }
 0x1b3   : > { %v1091_v10 = vadd.f32 %v1090_v5, %v6196_v28  ;;  %v1204_v63 = vadd.f32 %v1203_v6, %v6198_v46  ;;  %2724 = vmatprep.mubr.bf16.mxu1 %v4734_v17  ;;  %2797 = vmatprep.mubr.bf16.mxu0 %v4736_v52  ;;  %v1092_v12 = vpop.f32.mrb[30].mxu0  ;;  %v1205_v49 = vpop.f32.mrb[30].mxu1  ;;  %v5294_v52 = vld [vmem:[%s7196_s3 + $0x2c4] ss:$8 sps:$4 sm:$0xff]   ;;  %v5301_v6 = vld [vmem:[%s7196_s3 + $0x2f0] ss:$8 sps:$4 sm:$0xff]  }
 0x1b4   : > { %2829 = vmatpush1.bf16.msra.mxu0 %v5286_v16  ;;  %v1266_v51 = vmax.f32 %v1089_v47, 0.0  ;;  %v1268_v13 = vmax.f32 %v1202_v22, 0.0  ;;  %v1093_v41 = vadd.f32 %v1092_v12, %v6190_v26  ;;  %v1206_v29 = vadd.f32 %v1205_v49, %v6192_v27  ;;  %2725 = vmatmul.mubr.bf16.gmra.mrb[44].mxu1 %v4733_v33  ;;  %v1094_v31 = vpop.f32.mrb[31].mxu0  ;;  %v1207_v62 = vpop.f32.mrb[31].mxu1  ;;  %v5312_v12 = vld [vmem:[%s7196_s3 + $0x324] ss:$8 sps:$4 sm:$0xff]  }
 0x1b5   : > { %v1267_v0 = vmax.f32 %v1091_v10, 0.0  ;;  %v1269_v37 = vmax.f32 %v1204_v63, 0.0  ;;  %2830 = vmatprep.subr.bf16.mxu0 %v5291_v61  ;;  %2798 = vmatmul.mubr.bf16.gmra.mrb[44].mxu0 %v4735_v15  ;;  %v1095_v17 = vadd.f32 %v1094_v31, %v6196_v28  ;;  %v1208_v16 = vadd.f32 %v1207_v62, %v6198_v46  ;;  %v5292_v46 = vld [vmem:[%s7196_s3 + $0x2c0] ss:$8 sps:$4 sm:$0xff]   ;;  %v5309_v10 = vld [vmem:[%s7196_s3 + $0x314] ss:$8 sps:$4 sm:$0xff]  }
 0x1b6   : > { %v4749_v57 = vpack.c.bf16 %v1266_v51, %v1258_v4  ;;  %v6430_v47 = vpack.c.bf16 %v1268_v13, %v1260_v55  ;;  %v1270_v26 = vmax.f32 %v1093_v41, 0.0  ;;  %v1272_v27 = vmax.f32 %v1206_v29, 0.0  ;;  %2840 = vmatprep.mubr.bf16.mxu0 %v6223_v23  ;;  %v5297_v23 = vld [vmem:[%s7196_s3 + $0x2d4] ss:$8 sps:$4 sm:$0xff]   ;;  %v5307_v63 = vld [vmem:[%s7196_s3 + $0x310] ss:$8 sps:$4 sm:$0xff]  }
 0x1b7   : > { %v4750_v33 = vpack.c.bf16 %v1267_v0, %v1259_v35  ;;  %v6433_v22 = vpack.c.bf16 %v1269_v37, %v1261_v30  ;;  %v1271_v61 = vmax.f32 %v1095_v17, 0.0  ;;  %v1273_v15 = vmax.f32 %v1208_v16, 0.0  ;;  %v5306_v35 = vld [vmem:[%s7196_s3 + $0x304] ss:$8 sps:$4 sm:$0xff]   ;;  %v5304_v30 = vld [vmem:[%s7196_s3 + $0x300] ss:$8 sps:$4 sm:$0xff]  }
 0x1b8   : > { %v6435_v5 = vpack.c.bf16 %v1270_v26, %v1262_v59  ;;  %v6437_v28 = vpack.c.bf16 %v1272_v27, %v1264_v11  ;;  %2831 = vmatpush1.bf16.msra.mxu0 %v5289_v38  ;;  %v5295_v59 = vld [vmem:[%s7196_s3 + $0x2d0] ss:$8 sps:$4 sm:$0xff]   ;;  %v5300_v11 = vld [vmem:[%s7196_s3 + $0x2e4] ss:$8 sps:$4 sm:$0xff]   ;;  %v5310_v49 = vld [vmem:[%s7196_s3 + $0x320] ss:$8 sps:$4 sm:$0xff]  }
 0x1b9   : > { %v6442_v4 = vpack.c.bf16 %v1271_v61, %v1263_v2  ;;  %v6444_v55 = vpack.c.bf16 %v1273_v15, %v1265_v14  ;;  %2832 = vmatprep.subr.bf16.mxu0 %v5294_v52  ;;  %v5298_v2 = vld [vmem:[%s7196_s3 + $0x2e0] ss:$8 sps:$4 sm:$0xff]   ;;  %v5303_v14 = vld [vmem:[%s7196_s3 + $0x2f4] ss:$8 sps:$4 sm:$0xff]   ;;  %v5318_v51 = vld [vmem:[%s7196_s3 + $0x344] ss:$8 sps:$4 sm:$0xff]  }
 0x1ba   : > { %v5316_v13 = vld [vmem:[%s7196_s3 + $0x340] ss:$8 sps:$4 sm:$0xff]   ;;  %v5324_v38 = vld [vmem:[%s7196_s3 + $0x364] ss:$8 sps:$4 sm:$0xff]   ;;  %v5325_v29 = vld [vmem:[%s7196_s3 + $0x370] ss:$8 sps:$4 sm:$0xff]  }
 0x1bb   : > { %v5322_v41 = vld [vmem:[%s7196_s3 + $0x360] ss:$8 sps:$4 sm:$0xff]   ;;  %v5330_v31 = vld [vmem:[%s7196_s3 + $0x384] ss:$8 sps:$4 sm:$0xff]   ;;  %v5333_v0 = vld [vmem:[%s7196_s3 + $0x394] ss:$8 sps:$4 sm:$0xff]  }
 0x1bc   : > { %2833 = vmatpush1.bf16.msra.mxu0 %v5292_v46  ;;  %v5328_v62 = vld [vmem:[%s7196_s3 + $0x380] ss:$8 sps:$4 sm:$0xff]   ;;  %v5336_v37 = vld [vmem:[%s7196_s3 + $0x3a4] ss:$8 sps:$4 sm:$0xff]   ;;  %v5339_v16 = vld [vmem:[%s7196_s3 + $0x3b4] ss:$8 sps:$4 sm:$0xff]  }
 0x1bd   : > { %2834 = vmatprep.subr.bf16.mxu0 %v5297_v23  ;;  %v5334_v17 = vld [vmem:[%s7196_s3 + $0x3a0] ss:$8 sps:$4 sm:$0xff]   ;;  %v5337_v52 = vld [vmem:[%s7196_s3 + $0x3b0] ss:$8 sps:$4 sm:$0xff]   ;;  %v5345_v27 = vld [vmem:[%s7196_s3 + $0x3d4] ss:$8 sps:$4 sm:$0xff]  }
 0x1be   : > { %v5340_v26 = vld [vmem:[%s7196_s3 + $0x3c0] ss:$8 sps:$4 sm:$0xff]   ;;  %v5348_v61 = vld [vmem:[%s7196_s3 + $0x3e4] ss:$8 sps:$4 sm:$0xff]   ;;  %v5351_v46 = vld [vmem:[%s7196_s3 + $0x3f4] ss:$8 sps:$4 sm:$0xff]  }
 0x1bf   : > { %v5346_v15 = vld [vmem:[%s7196_s3 + $0x3e0] ss:$8 sps:$4 sm:$0xff]   ;;  %v5349_v23 = vld [vmem:[%s7196_s3 + $0x3f0] ss:$8 sps:$4 sm:$0xff]  }
 0x1c0   : > { %2835 = vmatpush1.bf16.msra.mxu0 %v5295_v59  ;;  %v5354_v59 = vld [vmem:[%s7196_s3 + $0x404] ss:$8 sps:$4 sm:$0xff]  }
 0x1c1   : > { %2836 = vmatprep.subr.bf16.mxu0 %v5300_v11  ;;  %v5352_v11 = vld [vmem:[%s7196_s3 + $0x400] ss:$8 sps:$4 sm:$0xff]  }
 0x1c4   : > { %2837 = vmatpush1.bf16.msra.mxu0 %v5298_v2  ;;  %v5357_v2 = vld [vmem:[%s7196_s3 + $0x414] ss:$8 sps:$4 sm:$0xff]  }
 0x1c5   : > { %2838 = vmatprep.subr.bf16.mxu0 %v5303_v14  ;;  %v5355_v14 = vld [vmem:[%s7196_s3 + $0x410] ss:$8 sps:$4 sm:$0xff]  }
 0x1c8   : > { %2839 = vmatpush1.bf16.msra.mxu0 %v5301_v6  ;;  %v5360_v6 = vld [vmem:[%s7196_s3 + $0x424] ss:$8 sps:$4 sm:$0xff]  }
 0x1c9   : > { %2881 = vmatprep.subr.bf16.mxu0 %v5306_v35  ;;  %v5358_v35 = vld [vmem:[%s7196_s3 + $0x420] ss:$8 sps:$4 sm:$0xff]  }
 0x1cb   : > { %2841 = vmatmul.mubr.bf16.vlgmr.msra.gmra.mrb[32].mxu0 %v6217_v42  ;;  %v5315_v42 = vld [vmem:[%s7196_s3 + $0x334] ss:$8 sps:$4 sm:$0xff]  }
 0x1cc   : > { %2850 = vmatprep.mubr.bf16.mxu0 %v6292_v56  ;;  %2882 = vmatpush1.bf16.msra.mxu0 %v5304_v30  ;;  %v5313_v56 = vld [vmem:[%s7196_s3 + $0x330] ss:$8 sps:$4 sm:$0xff]   ;;  %v5366_v30 = vld [vmem:[%s7196_s3 + $0x444] ss:$8 sps:$4 sm:$0xff]  }
 0x1cd   : > { %2883 = vmatprep.subr.bf16.mxu0 %v5309_v10  ;;  %v5364_v10 = vld [vmem:[%s7196_s3 + $0x440] ss:$8 sps:$4 sm:$0xff]  }
 0x1d0   : > { %2884 = vmatpush1.bf16.msra.mxu0 %v5307_v63  ;;  %v5372_v63 = vld [vmem:[%s7196_s3 + $0x464] ss:$8 sps:$4 sm:$0xff]  }
 0x1d1   : > { %2885 = vmatprep.subr.bf16.mxu0 %v5312_v12  ;;  %v5370_v12 = vld [vmem:[%s7196_s3 + $0x460] ss:$8 sps:$4 sm:$0xff]  }
 0x1d3   : > { %2851 = vmatmul.mubr.bf16.gmra.mrb[36].mxu0 %v6288_v1  ;;  %v5321_v1 = vld [vmem:[%s7196_s3 + $0x354] ss:$8 sps:$4 sm:$0xff]  }
 0x1d4   : > { %2860 = vmatprep.mubr.bf16.mxu0 %v6360_v32  ;;  %2886 = vmatpush1.bf16.msra.mxu0 %v5310_v49  ;;  %v5319_v32 = vld [vmem:[%s7196_s3 + $0x350] ss:$8 sps:$4 sm:$0xff]   ;;  %v5449_v49 = vld [vmem:[%s7198_s5] sm:$0xff]  }
 0x1d5   : > { %2887 = vmatprep.subr.bf16.mxu0 %v5315_v42  ;;  %v5450_v42 = vld [vmem:[%s7198_s5 + $0x48] sm:$0xff]  }
 0x1d8   : > { %2888 = vmatpush1.bf16.msra.mxu0 %v5313_v56  ;;  %v5373_v56 = vld [vmem:[%s7196_s3 + $0x470] ss:$8 sps:$4 sm:$0xff]  }
 0x1d9   : > { %2889 = vmatprep.subr.bf16.mxu0 %v5318_v51  ;;  %v5451_v51 = vld [vmem:[%s7198_s5 + $0x8] sm:$0xff]  }
 0x1db   : > { %2861 = vmatmul.mubr.bf16.gmra.mrb[40].mxu0 %v6356_v18  ;;  %v5327_v18 = vld [vmem:[%s7196_s3 + $0x374] ss:$8 sps:$4 sm:$0xff]  }
 0x1dc   : > { %2870 = vmatprep.mubr.bf16.mxu0 %v4750_v33  ;;  %2890 = vmatpush1.bf16.msra.mxu0 %v5316_v13  ;;  %v5343_v33 = vld [vmem:[%s7196_s3 + $0x3d0] ss:$8 sps:$4 sm:$0xff]   ;;  %v5376_v13 = vld [vmem:[%s7196_s3 + $0x480] ss:$8 sps:$4 sm:$0xff]  }
 0x1dd   : > { %2891 = vmatprep.subr.bf16.mxu0 %v5321_v1  ;;  %v5381_v1 = vld [vmem:[%s7196_s3 + $0x494] ss:$8 sps:$4 sm:$0xff]  }
 0x1e0   : > { %2892 = vmatpush1.bf16.msra.mxu0 %v5319_v32  ;;  %v5453_v32 = vld [vmem:[%s7198_s5 + $0x10] sm:$0xff]  }
 0x1e1   : > { %2893 = vmatprep.subr.bf16.mxu0 %v5324_v38  ;;  %v5454_v38 = vld [vmem:[%s7198_s5 + $0x58] sm:$0xff]  }
 0x1e3   : > { %2871 = vmatmul.mubr.bf16.gmra.mrb[44].mxu0 %v4749_v57  ;;  %v5342_v57 = vld [vmem:[%s7196_s3 + $0x3c4] ss:$8 sps:$4 sm:$0xff]  }
 0x1e4   : > { %2894 = vmatpush1.bf16.msra.mxu0 %v5322_v41  ;;  %2913 = vmatprep.mubr.bf16.mxu0 %v6225_v25  ;;  %v5331_v25 = vld [vmem:[%s7196_s3 + $0x390] ss:$8 sps:$4 sm:$0xff]  }
 0x1e5   : > { %2895 = vmatprep.subr.bf16.mxu0 %v5327_v18  ;;  %v5379_v41 = vld [vmem:[%s7196_s3 + $0x490] ss:$8 sps:$4 sm:$0xff]   ;;  %v5384_v18 = vld [vmem:[%s7196_s3 + $0x4a4] ss:$8 sps:$4 sm:$0xff]  }
 0x1e8   : > { %2896 = vmatpush1.bf16.msra.mxu0 %v5325_v29  ;;  %v5455_v29 = vld [vmem:[%s7198_s5 + $0x18] sm:$0xff]  }
 0x1e9   : > { %2897 = vmatprep.subr.bf16.mxu0 %v5330_v31  ;;  %v5456_v31 = vld [vmem:[%s7198_s5 + $0x60] sm:$0xff]  }
 0x1ec   : > { %2898 = vmatpush1.bf16.msra.mxu0 %v5328_v62  ;;  %v5382_v62 = vld [vmem:[%s7196_s3 + $0x4a0] ss:$8 sps:$4 sm:$0xff]  }
 0x1ed   : > { %2899 = vmatprep.subr.bf16.mxu0 %v5333_v0  ;;  %v5387_v0 = vld [vmem:[%s7196_s3 + $0x4b4] ss:$8 sps:$4 sm:$0xff]  }
 0x1f0   : > { %2900 = vmatpush1.bf16.msra.mxu0 %v5331_v25  ;;  %v5457_v25 = vld [vmem:[%s7198_s5 + $0x20] sm:$0xff]  }
 0x1f1   : > { %2901 = vmatprep.subr.bf16.mxu0 %v5336_v37  ;;  %v5385_v37 = vld [vmem:[%s7196_s3 + $0x4b0] ss:$8 sps:$4 sm:$0xff]  }
 0x1f4   : > { %2902 = vmatpush1.bf16.msra.mxu0 %v5334_v17  ;;  %v5390_v17 = vld [vmem:[%s7196_s3 + $0x4c4] ss:$8 sps:$4 sm:$0xff]  }
 0x1f5   : > { %2903 = vmatprep.subr.bf16.mxu0 %v5339_v16  ;;  %v5388_v16 = vld [vmem:[%s7196_s3 + $0x4c0] ss:$8 sps:$4 sm:$0xff]  }
 0x1f8   : > { %2904 = vmatpush1.bf16.msra.mxu0 %v5337_v52  ;;  %v5393_v52 = vld [vmem:[%s7196_s3 + $0x4d4] ss:$8 sps:$4 sm:$0xff]  }
 0x1f9   : > { %2905 = vmatprep.subr.bf16.mxu0 %v5342_v57  ;;  %v5391_v57 = vld [vmem:[%s7196_s3 + $0x4d0] ss:$8 sps:$4 sm:$0xff]  }
 0x1fc   : > { %2906 = vmatpush1.bf16.msra.mxu0 %v5340_v26  ;;  %v5396_v26 = vld [vmem:[%s7196_s3 + $0x4e4] ss:$8 sps:$4 sm:$0xff]  }
 0x1fd   : > { %2907 = vmatprep.subr.bf16.mxu0 %v5345_v27  ;;  %v5394_v27 = vld [vmem:[%s7196_s3 + $0x4e0] ss:$8 sps:$4 sm:$0xff]  }
 0x200   : > { %2908 = vmatpush1.bf16.msra.mxu0 %v5343_v33  ;;  %v5399_v33 = vld [vmem:[%s7196_s3 + $0x4f4] ss:$8 sps:$4 sm:$0xff]  }
 0x201   : > { %2909 = vmatprep.subr.bf16.mxu0 %v5348_v61  ;;  %v5397_v61 = vld [vmem:[%s7196_s3 + $0x4f0] ss:$8 sps:$4 sm:$0xff]  }
 0x204   : > { %2910 = vmatpush1.bf16.msra.mxu0 %v5346_v15  ;;  %v5402_v15 = vld [vmem:[%s7196_s3 + $0x504] ss:$8 sps:$4 sm:$0xff]  }
 0x205   : > { %2911 = vmatprep.subr.bf16.mxu0 %v5351_v46  ;;  %v5400_v46 = vld [vmem:[%s7196_s3 + $0x500] ss:$8 sps:$4 sm:$0xff]  }
 0x208   : > { %2912 = vmatpush1.bf16.msra.mxu0 %v5349_v23  ;;  %v5405_v23 = vld [vmem:[%s7196_s3 + $0x514] ss:$8 sps:$4 sm:$0xff]  }
 0x209   : > { %2954 = vmatprep.subr.bf16.mxu0 %v5354_v59  ;;  %v5403_v59 = vld [vmem:[%s7196_s3 + $0x510] ss:$8 sps:$4 sm:$0xff]  }
 0x20b   : > { %2914 = vmatmul.mubr.bf16.vlgmr.msra.gmra.mrb[32].mxu0 %v6219_v45  ;;  %v5363_v45 = vld [vmem:[%s7196_s3 + $0x434] ss:$8 sps:$4 sm:$0xff]  }
 0x20c   : > { %2923 = vmatprep.mubr.bf16.mxu0 %v6294_v58  ;;  %2955 = vmatpush1.bf16.msra.mxu0 %v5352_v11  ;;  %v5361_v58 = vld [vmem:[%s7196_s3 + $0x430] ss:$8 sps:$4 sm:$0xff]   ;;  %v5408_v11 = vld [vmem:[%s7196_s3 + $0x524] ss:$8 sps:$4 sm:$0xff]  }
 0x20d   : > { %2956 = vmatprep.subr.bf16.mxu0 %v5357_v2  ;;  %v5406_v2 = vld [vmem:[%s7196_s3 + $0x520] ss:$8 sps:$4 sm:$0xff]  }
 0x210   : > { %2957 = vmatpush1.bf16.msra.mxu0 %v5355_v14  ;;  %v5414_v14 = vld [vmem:[%s7196_s3 + $0x544] ss:$8 sps:$4 sm:$0xff]  }
 0x211   : > { %2958 = vmatprep.subr.bf16.mxu0 %v5360_v6  ;;  %v5412_v6 = vld [vmem:[%s7196_s3 + $0x540] ss:$8 sps:$4 sm:$0xff]  }
 0x213   : > { %2924 = vmatmul.mubr.bf16.gmra.mrb[36].mxu0 %v6290_v3  ;;  %v5369_v3 = vld [vmem:[%s7196_s3 + $0x454] ss:$8 sps:$4 sm:$0xff]  }
 0x214   : > { %2933 = vmatprep.mubr.bf16.mxu0 %v6362_v34  ;;  %2959 = vmatpush1.bf16.msra.mxu0 %v5358_v35  ;;  %v5367_v34 = vld [vmem:[%s7196_s3 + $0x450] ss:$8 sps:$4 sm:$0xff]   ;;  %v5420_v35 = vld [vmem:[%s7196_s3 + $0x564] ss:$8 sps:$4 sm:$0xff]  }
 0x215   : > { %2960 = vmatprep.subr.bf16.mxu0 %v5363_v45 }
 0x218   : > { %2961 = vmatpush1.bf16.msra.mxu0 %v5361_v58 }
 0x219   : > { %2962 = vmatprep.subr.bf16.mxu0 %v5366_v30 }
 0x21b   : > { %2934 = vmatmul.mubr.bf16.gmra.mrb[40].mxu0 %v6358_v19  ;;  %v5375_v19 = vld [vmem:[%s7196_s3 + $0x474] ss:$8 sps:$4 sm:$0xff]  }
 0x21c   : > { %2943 = vmatprep.mubr.bf16.mxu0 %v6433_v22  ;;  %2963 = vmatpush1.bf16.msra.mxu0 %v5364_v10  ;;  %v5448_v22 = vld [vmem:[%s7198_s5 + $0x40] sm:$0xff]   ;;  %v5423_v10 = vld [vmem:[%s7196_s3 + $0x574] ss:$8 sps:$4 sm:$0xff]  }
 0x21d   : > { %2964 = vmatprep.subr.bf16.mxu0 %v5369_v3  ;;  %4783 = vmatprep.subr.bf16.mxu1 %v5448_v22  ;;  %v5421_v3 = vld [vmem:[%s7196_s3 + $0x570] ss:$8 sps:$4 sm:$0xff]  }
 0x21e   : > { %4784 = vmatpush3.bf16.msra.mxu1 %v5449_v49  ;;  %v5427_v49 = vld [vmem:[%s7196_s3 + $0x590] ss:$8 sps:$4 sm:$0xff]  }
 0x21f   : > { %4785 = vmatprep.subr.bf16.mxu1 %v5450_v42  ;;  %v5432_v42 = vld [vmem:[%s7196_s3 + $0x5a4] ss:$8 sps:$4 sm:$0xff]  }
 0x220   : > { %2965 = vmatpush1.bf16.msra.mxu0 %v5367_v34  ;;  %v5426_v34 = vld [vmem:[%s7196_s3 + $0x584] ss:$8 sps:$4 sm:$0xff]  }
 0x221   : > { %2966 = vmatprep.subr.bf16.mxu0 %v5372_v63 }
 0x222   : > { %4786 = vmatpush3.bf16.msra.mxu1 %v5451_v51  ;;  %v5433_v51 = vld [vmem:[%s7196_s3 + $0x5b0] ss:$8 sps:$4 sm:$0xff]  }
 0x223   : > { %2944 = vmatmul.mubr.bf16.gmra.mrb[44].mxu0 %v6430_v47  ;;  %v5378_v47 = vld [vmem:[%s7196_s3 + $0x484] ss:$8 sps:$4 sm:$0xff]  }
 0x224   : > { %2967 = vmatpush1.bf16.msra.mxu0 %v5370_v12  ;;  %2986 = vmatprep.mubr.bf16.mxu0 %v6241_v44  ;;  %v5452_v44 = vld [vmem:[%s7198_s5 + $0x50] sm:$0xff]   ;;  %v5424_v12 = vld [vmem:[%s7196_s3 + $0x580] ss:$8 sps:$4 sm:$0xff]  }
 0x225   : > { %2968 = vmatprep.subr.bf16.mxu0 %v5375_v19  ;;  %4787 = vmatprep.subr.bf16.mxu1 %v5452_v44  ;;  %v5438_v44 = vld [vmem:[%s7196_s3 + $0x5c4] ss:$8 sps:$4 sm:$0xff]  }
 0x226   : > { %4788 = vmatpush3.bf16.msra.mxu1 %v5453_v32 }
 0x227   : > { %4789 = vmatprep.subr.bf16.mxu1 %v5454_v38 }
 0x228   : > { %2969 = vmatpush1.bf16.msra.mxu0 %v5373_v56  ;;  %v5430_v56 = vld [vmem:[%s7196_s3 + $0x5a0] ss:$8 sps:$4 sm:$0xff]  }
 0x229   : > { %2970 = vmatprep.subr.bf16.mxu0 %v5378_v47  ;;  %v5435_v47 = vld [vmem:[%s7196_s3 + $0x5b4] ss:$8 sps:$4 sm:$0xff]  }
 0x22a   : > { %4790 = vmatpush3.bf16.msra.mxu1 %v5455_v29  ;;  %v5439_v29 = vld [vmem:[%s7196_s3 + $0x5d0] ss:$8 sps:$4 sm:$0xff]  }
 0x22b   : > { %4791 = vmatprep.subr.bf16.mxu1 %v5456_v31  ;;  %v5444_v31 = vld [vmem:[%s7196_s3 + $0x5e4] ss:$8 sps:$4 sm:$0xff]  }
 0x22c   : > { %2971 = vmatpush1.bf16.msra.mxu0 %v5376_v13 }
 0x22d   : > { %2972 = vmatprep.subr.bf16.mxu0 %v5381_v1  ;;  %v5436_v1 = vld [vmem:[%s7196_s3 + $0x5c0] ss:$8 sps:$4 sm:$0xff]  }
 0x22e   : > { %4792 = vmatpush3.bf16.msra.mxu1 %v5457_v25  ;;  %v5445_v25 = vld [vmem:[%s7196_s3 + $0x5f0] ss:$8 sps:$4 sm:$0xff]  }
 0x22f   : > { %4793 = vmatprep.subr.bf16.mxu1 %v5458_v20 }
 0x230   : > { %2973 = vmatpush1.bf16.msra.mxu0 %v5379_v41  ;;  %v5441_v41 = vld [vmem:[%s7196_s3 + $0x5d4] ss:$8 sps:$4 sm:$0xff]  }
 0x231   : > { %2974 = vmatprep.subr.bf16.mxu0 %v5384_v18 }
 0x234   : > { %2975 = vmatpush1.bf16.msra.mxu0 %v5382_v62  ;;  %v5442_v62 = vld [vmem:[%s7196_s3 + $0x5e0] ss:$8 sps:$4 sm:$0xff]  }
 0x235   : > { %2976 = vmatprep.subr.bf16.mxu0 %v5387_v0  ;;  %v5447_v0 = vld [vmem:[%s7196_s3 + $0x5f4] ss:$8 sps:$4 sm:$0xff]  }
 0x238   : > { %2977 = vmatpush1.bf16.msra.mxu0 %v5385_v37  ;;  %v1690_v37 = vld [vmem:[%s7197_s4] sm:$0x3] }
 0x239   : > { %2978 = vmatprep.subr.bf16.mxu0 %v5390_v17 }
 0x23c   : > { %2979 = vmatpush1.bf16.msra.mxu0 %v5388_v16  ;;  %v6835_v16 = vrot.slane %v1690_v37, %v829_v21  ;;  %v5459_v21 = vld [vmem:[%s7198_s5 + $0x28] sm:$0xff]  }
 0x23d   : > { %2980 = vmatprep.subr.bf16.mxu0 %v5393_v52  ;;  %4794 = vmatpush3.bf16.msra.mxu1 %v5459_v21  ;;  %v5467_v21 = vld [vmem:[%s7198_s5 + $0x88] sm:$0xff]  }
 0x240   : > { %2981 = vmatpush1.bf16.msra.mxu0 %v5391_v57  ;;  %v6841_v57 = vrot.slane %v1690_v37, %v833_v24  ;;  %v5460_v24 = vld [vmem:[%s7198_s5 + $0x70] sm:$0xff]  }
 0x241   : > { %2982 = vmatprep.subr.bf16.mxu0 %v5396_v26  ;;  %4795 = vmatprep.subr.bf16.mxu1 %v5460_v24 }
 0x244   : > { %2983 = vmatpush1.bf16.msra.mxu0 %v5394_v27 }
 0x245   : > { %2984 = vmatprep.subr.bf16.mxu0 %v5399_v33 }
 0x248   : > { %2985 = vmatpush1.bf16.msra.mxu0 %v5397_v61 }
 0x249   : > { %3027 = vmatprep.subr.bf16.mxu0 %v5402_v15 }
 0x24b   : > { %2987 = vmatmul.mubr.bf16.vlgmr.msra.gmra.mrb[32].mxu0 %v6234_v39  ;;  %v5411_v39 = vld [vmem:[%s7196_s3 + $0x534] ss:$8 sps:$4 sm:$0xff]  }
 0x24c   : > { %2996 = vmatprep.mubr.bf16.mxu0 %v6303_v43  ;;  %3028 = vmatpush1.bf16.msra.mxu0 %v5400_v46  ;;  %v5409_v43 = vld [vmem:[%s7196_s3 + $0x530] ss:$8 sps:$4 sm:$0xff]  }
 0x24d   : > { %3029 = vmatprep.subr.bf16.mxu0 %v5405_v23 }
 0x250   : > { %3030 = vmatpush1.bf16.msra.mxu0 %v5403_v59 }
 0x251   : > { %3031 = vmatprep.subr.bf16.mxu0 %v5408_v11 }
 0x253   : > { %2997 = vmatmul.mubr.bf16.gmra.mrb[36].mxu0 %v6296_v7  ;;  %v5417_v7 = vld [vmem:[%s7196_s3 + $0x554] ss:$8 sps:$4 sm:$0xff]  }
 0x254   : > { %3006 = vmatprep.mubr.bf16.mxu0 %v6371_v54  ;;  %3032 = vmatpush1.bf16.msra.mxu0 %v5406_v2  ;;  %v5415_v54 = vld [vmem:[%s7196_s3 + $0x550] ss:$8 sps:$4 sm:$0xff]  }
 0x255   : > { %3033 = vmatprep.subr.bf16.mxu0 %v5411_v39 }
 0x258   : > { %3034 = vmatpush1.bf16.msra.mxu0 %v5409_v43 }
 0x259   : > { %3035 = vmatprep.subr.bf16.mxu0 %v5414_v14 }
 0x25b   : > { %3007 = vmatmul.mubr.bf16.gmra.mrb[40].mxu0 %v6364_v36  ;;  %v5418_v36 = vld [vmem:[%s7196_s3 + $0x560] ss:$8 sps:$4 sm:$0xff]  }
 0x25c   : > { %3016 = vmatprep.mubr.bf16.mxu0 %v6442_v4  ;;  %3036 = vmatpush1.bf16.msra.mxu0 %v5412_v6 }
 0x25d   : > { %3037 = vmatprep.subr.bf16.mxu0 %v5417_v7 }
 0x25e   : > { %v6745_v45 = vpop.f32.mrb[32].mxu1 }
 0x25f   : > { %v6747_v58 = vpop.f32.mrb[33].mxu1 }
 0x260   : > { %3038 = vmatpush1.bf16.msra.mxu0 %v5415_v54  ;;  %v6749_v30 = vpop.f32.mrb[34].mxu1 }
 0x261   : > { %v6754_v4 = vpop.f32.mrb[35].mxu1  ;;  %3039 = vmatprep.subr.bf16.mxu0 %v5420_v35  ;;  %v2701_v15 = vadd.f32 %v6749_v30, %v6835_v16 }
 0x262   : > { %v2703_v59 = vadd.f32 %v6754_v4, %v6841_v57 }
 0x263   : > { %3017 = vmatmul.mubr.bf16.gmra.mrb[44].mxu0 %v6435_v5 }
 0x264   : > { %3040 = vmatpush1.bf16.msra.mxu0 %v5418_v36  ;;  %3059 = vmatprep.mubr.bf16.mxu0 %v6243_v48  ;;  %v5429_v48 = vld [vmem:[%s7196_s3 + $0x594] ss:$8 sps:$4 sm:$0xff]  }
 0x265   : > { %3041 = vmatprep.subr.bf16.mxu0 %v5423_v10 }
 0x267   : > { %v6767_v63 = vpop.f32.mrb[36].mxu1 }
 0x268   : > { %3042 = vmatpush1.bf16.msra.mxu0 %v5421_v3  ;;  %v6772_v5 = vpop.f32.mrb[37].mxu1 }
 0x269   : > { %3043 = vmatprep.subr.bf16.mxu0 %v5426_v34  ;;  %v6777_v19 = vpop.f32.mrb[38].mxu1  ;;  %v2709_v30 = vadd.f32 %v6772_v5, %v6841_v57 }
 0x26a   : > { %v6779_v22 = vpop.f32.mrb[39].mxu1  ;;  %v2711_v4 = vadd.f32 %v6777_v19, %v6835_v16  ;;  %v5465_v19 = vld [vmem:[%s7198_s5 + $0x80] sm:$0xff]  }
 0x26c   : > { %3044 = vmatpush1.bf16.msra.mxu0 %v5424_v12 }
 0x26d   : > { %3045 = vmatprep.subr.bf16.mxu0 %v5429_v48  ;;  %v2713_v48 = vadd.f32 %v6779_v22, %v6841_v57  ;;  %v5466_v22 = vld [vmem:[%s7198_s5 + $0xc8] sm:$0xff]  }
 0x270   : > { %3046 = vmatpush1.bf16.msra.mxu0 %v5427_v49 }
 0x271   : > { %3047 = vmatprep.subr.bf16.mxu0 %v5432_v42 }
 0x274   : > { %3048 = vmatpush1.bf16.msra.mxu0 %v5430_v56 }
 0x275   : > { %3049 = vmatprep.subr.bf16.mxu0 %v5435_v47 }
 0x277   : > { %v6799_v13 = vpop.f32.mrb[40].mxu1 }
 0x278   : > { %3050 = vmatpush1.bf16.msra.mxu0 %v5433_v51  ;;  %v6804_v32 = vpop.f32.mrb[41].mxu1 }
 0x279   : > { %3051 = vmatprep.subr.bf16.mxu0 %v5438_v44  ;;  %v6806_v38 = vpop.f32.mrb[42].mxu1 }
 0x27a   : > { %v6811_v18 = vpop.f32.mrb[43].mxu1  ;;  %v2721_v24 = vadd.f32 %v6806_v38, %v6835_v16  ;;  %v5469_v38 = vld [vmem:[%s7198_s5 + $0x90] sm:$0xff]  }
 0x27c   : > { %3052 = vmatpush1.bf16.msra.mxu0 %v5436_v1 }
 0x27d   : > { %3053 = vmatprep.subr.bf16.mxu0 %v5441_v41 }
 0x280   : > { %3054 = vmatpush1.bf16.msra.mxu0 %v5439_v29 }
 0x281   : > { %3055 = vmatprep.subr.bf16.mxu0 %v5444_v31 }
 0x284   : > { %3056 = vmatpush1.bf16.msra.mxu0 %v5442_v62 }
 0x285   : > { %3057 = vmatprep.subr.bf16.mxu0 %v5447_v0 }
 0x287   : > { %v6831_v17 = vpop.f32.mrb[44].mxu1 }
 0x288   : > { %3058 = vmatpush1.bf16.msra.mxu0 %v5445_v25  ;;  %v6837_v52 = vpop.f32.mrb[45].mxu1  ;;  %v2717_v25 = vadd.f32 %v6799_v13, %v6835_v16  ;;  %v5468_v13 = vld [vmem:[%s7198_s5 + $0xd0] sm:$0xff]  }
 0x289   : > { %v2730_v26 = vpop.f32.mrb[46].mxu1 }
 0x28a   : > { %v6844_v27 = vadd.f32 %v2730_v26, %v6835_v16  ;;  %v2732_v33 = vpop.f32.mrb[47].mxu1  ;;  %v2719_v26 = vadd.f32 %v6804_v32, %v6841_v57  ;;  %v2723_v32 = vadd.f32 %v6811_v18, %v6841_v57  ;;  %v2727_v18 = vadd.f32 %v6831_v17, %v6835_v16 }
 0x28b   : > { %3060 = vmatmul.mubr.bf16.vlgmr.msra.gmra.mrb[32].mxu0 %v6236_v40  ;;  %v6848_v61 = vadd.f32 %v2732_v33, %v6841_v57  ;;  %v5461_v40 = vld [vmem:[%s7198_s5 + $0x30] sm:$0xff]  }
 0x28c   : > { %3069 = vmatprep.mubr.bf16.mxu0 %v6305_v60  ;;  %4796 = vmatpush3.bf16.msra.mxu1 %v5461_v40  ;;  %v5463_v60 = vld [vmem:[%s7198_s5 + $0x38] sm:$0xff]  }
 0x293   : > { %3070 = vmatmul.mubr.bf16.gmra.mrb[36].mxu0 %v6298_v8  ;;  %v5462_v8 = vld [vmem:[%s7198_s5 + $0x78] sm:$0xff]  }
 0x294   : > { %3079 = vmatprep.mubr.bf16.mxu0 %v6373_v53  ;;  %4797 = vmatprep.subr.bf16.mxu1 %v5462_v8  ;;  %v2697_v53 = vadd.f32 %v6745_v45, %v6835_v16  ;;  %v2707_v45 = vadd.f32 %v6767_v63, %v6835_v16 }
 0x295   : > { %4798 = vmatpush3.bf16.msra.mxu1 %v5463_v60 }
 0x29b   : > { %3080 = vmatmul.mubr.bf16.gmra.mrb[40].mxu0 %v6366_v50  ;;  %v5464_v50 = vld [vmem:[%s7198_s5 + $0xc0] sm:$0xff]  }
 0x29c   : > { %3089 = vmatprep.mubr.bf16.mxu0 %v6444_v55  ;;  %4811 = vmatprep.subr.bf16.mxu1 %v5464_v50 }
 0x2a3   : > { %3090 = vmatmul.mubr.bf16.gmra.mrb[44].mxu0 %v6437_v28  ;;  %v2699_v28 = vadd.f32 %v6747_v58, %v6841_v57 }
 0x35e   : > { %v3061_v55 = vpop.f32.mrb[32].mxu0 }
 0x35f   : > { %v4977_v46 = vadd.f32 %v3061_v55, %v2697_v53  ;;  %v3063_v23 = vpop.f32.mrb[33].mxu0 }
 0x360   : > { %v4979_v11 = vadd.f32 %v3063_v23, %v2699_v28  ;;  %v3065_v2 = vpop.f32.mrb[34].mxu0 }
 0x361   : > { %v4981_v39 = vadd.f32 %v3065_v2, %v2701_v15  ;;  %v3067_v43 = vpop.f32.mrb[35].mxu0  ;;  %v3100_v6 = vmax.f32 %v4977_v46, 0.0  ;;  %v5470_v46 = vld [vmem:[%s7198_s5 + $0xd8] sm:$0xff]  }
 0x362   : > { %v4983_v14 = vadd.f32 %v3067_v43, %v2703_v59  ;;  %v3101_v54 = vmax.f32 %v4979_v11, 0.0  ;;  %v2729_v11 = vadd.f32 %v6837_v52, %v6841_v57  ;;  %v5471_v43 = vld [vmem:[%s7198_s5 + $0x98] sm:$0xff]  }
 0x363   : > { %v3102_v7 = vmax.f32 %v4981_v39, 0.0 }
 0x364   : > { %v3103_v35 = vmax.f32 %v4983_v14, 0.0 }
 0x365   : > { %v3116_v58 = vpack.c.bf16 %v3102_v7, %v3100_v6 }
 0x366   : > { %v3117_v36 = vpack.c.bf16 %v3103_v35, %v3101_v54  ;;  %v3071_v10 = vpop.f32.mrb[36].mxu0 }
 0x367   : > { %v3134_v3 = vunpack.c.h.b16 %v3116_v58  ;;  %v4985_v34 = vadd.f32 %v3071_v10, %v2707_v45  ;;  %v3073_v12 = vpop.f32.mrb[37].mxu0 }
 0x368   : > { %v3135_v49 = vunpack.c.h.b16 %v3117_v36  ;;  %v4987_v42 = vadd.f32 %v3073_v12, %v2709_v30  ;;  %v3075_v56 = vpop.f32.mrb[38].mxu0  ;;  %v5473_v36 = vld [vmem:[%s7198_s5 + $0xa0] sm:$0xff]  }
 0x369   : > { %v3104_v47 = vmax.f32 %v4985_v34, 0.0  ;;  %v4989_v63 = vadd.f32 %v3075_v56, %v2711_v4  ;;  %v3077_v51 = vpop.f32.mrb[39].mxu0  ;;  %v3148_v41 = vpack.c.b16 %v3134_v3, %v6209_v9  ;;  %v5474_v3 = vld [vmem:[%s7198_s5 + $0xe8] sm:$0xff]   ;;  %v5478_v56 = vld [vmem:[%s7198_s5 + $0xf8] sm:$0xff]  }
 0x36a   : > { %v3105_v44 = vmax.f32 %v4987_v42, 0.0  ;;  %v4991_v1 = vadd.f32 %v3077_v51, %v2713_v48  ;;  %v3149_v5 = vpack.c.b16 %v3135_v49, %v6209_v9  ;;  %v5476_v49 = vld [vmem:[%s7198_s5 + $0xf0] sm:$0xff]   ;;  %v5481_v51 = vld [vmem:[%s7198_s5 + $0x100] sm:$0xff]  }
 0x36b   : > { %v6898_v29 = vpack.c.bf16 %v3104_v47, %v3100_v6  ;;  %v3106_v31 = vmax.f32 %v4989_v63, 0.0  ;;  %v5477_v42 = vld [vmem:[%s7198_s5 + $0xb0] sm:$0xff]   ;;  %v5479_v47 = vld [vmem:[%s7198_s5 + $0xb8] sm:$0xff]   ;;  %v5480_v63 = vld [vmem:[%s7198_s5 + $0x140] sm:$0xff]  }
 0x36c   : > { %v4772_v62 = vpack.c.bf16 %v3105_v44, %v3101_v54  ;;  %v3107_v0 = vmax.f32 %v4991_v1, 0.0  ;;  %3595 = vmatprep.mubr.bf16.mxu1 %v3149_v5  ;;  %v5482_v44 = vld [vmem:[%s7198_s5 + $0x148] sm:$0xff]   ;;  %v5484_v5 = vld [vmem:[%s7198_s5 + $0x150] sm:$0xff]  }
 0x36d   : > { %v6905_v37 = vpack.c.bf16 %v3106_v31, %v3102_v7  ;;  %3596 = vmatmul.mubr.bf16.vlgmr.msra.gmra.mrb[48].mxu1 %v3148_v41  ;;  %v5472_v7 = vld [vmem:[%s7198_s5 + $0xe0] sm:$0xff]   ;;  %v5483_v1 = vld [vmem:[%s7198_s5 + $0x108] sm:$0xff]   ;;  %v5486_v41 = vld [vmem:[%s7198_s5 + $0x158] sm:$0xff]  }
 0x36e   : > { %v6909_v33 = vpack.c.bf16 %v3107_v0, %v3103_v35  ;;  %4812 = vmatpush3.bf16.msra.mxu1 %v5465_v19  ;;  %v3081_v20 = vpop.f32.mrb[40].mxu0  ;;  %v5485_v19 = vld [vmem:[%s7198_s5 + $0x110] sm:$0xff]  }
 0x36f   : > { %v4993_v40 = vadd.f32 %v3081_v20, %v2717_v25  ;;  %v3083_v8 = vpop.f32.mrb[41].mxu0  ;;  %4813 = vmatprep.subr.bf16.mxu1 %v5466_v22  ;;  %v5489_v22 = vld [vmem:[%s7198_s5 + $0x120] sm:$0xff]   ;;  %v5492_v25 = vld [vmem:[%s7198_s5 + $0x170] sm:$0xff]   ;;  %v5495_v20 = vld [vmem:[%s7198_s5 + $0x138] sm:$0xff]  }
 0x370   : > { %v4995_v60 = vadd.f32 %v3083_v8, %v2719_v26  ;;  %v3085_v50 = vpop.f32.mrb[42].mxu0  ;;  %v5493_v26 = vld [vmem:[%s7198_s5 + $0x130] sm:$0xff]  }
 0x371   : > { %v4997_v53 = vadd.f32 %v3085_v50, %v2721_v24  ;;  %v3087_v28 = vpop.f32.mrb[43].mxu0  ;;  %v3108_v16 = vmax.f32 %v4993_v40, 0.0  ;;  %v5497_v24 = vld [vmem:[%s7200_s7] sm:$0xff]   ;;  %v5498_v40 = vld [vmem:[%s7200_s7 + $0x48] sm:$0xff]   ;;  %v5500_v8 = vld [vmem:[%s7200_s7 + $0x50] sm:$0xff]  }
 0x372   : > { %v4999_v55 = vadd.f32 %v3087_v28, %v2723_v32  ;;  %4814 = vmatpush3.bf16.msra.mxu1 %v5467_v21  ;;  %v3109_v45 = vmax.f32 %v4995_v60, 0.0  ;;  %v5496_v21 = vld [vmem:[%s7200_s7 + $0x40] sm:$0xff]   ;;  %v5502_v32 = vld [vmem:[%s7200_s7 + $0x58] sm:$0xff]   ;;  %v5506_v28 = vld [vmem:[%s7200_s7 + $0x68] sm:$0xff]  }
 0x373   : > { %v3110_v15 = vmax.f32 %v4997_v53, 0.0  ;;  %4815 = vmatprep.subr.bf16.mxu1 %v5468_v13  ;;  %v5501_v13 = vld [vmem:[%s7200_s7 + $0x10] sm:$0xff]   ;;  %v5503_v60 = vld [vmem:[%s7200_s7 + $0x18] sm:$0xff]   ;;  %v5504_v50 = vld [vmem:[%s7200_s7 + $0x60] sm:$0xff]  }
 0x374   : > { %v3111_v23 = vmax.f32 %v4999_v55, 0.0  ;;  %v5505_v53 = vld [vmem:[%s7200_s7 + $0x20] sm:$0xff]   ;;  %v5507_v55 = vld [vmem:[%s7200_s7 + $0x28] sm:$0xff]  }
 0x375   : > { %v4769_v59 = vpack.c.bf16 %v3110_v15, %v3106_v31  ;;  %v5488_v31 = vld [vmem:[%s7198_s5 + $0x160] sm:$0xff]  }
 0x376   : > { %v4770_v2 = vpack.c.bf16 %v3111_v23, %v3107_v0  ;;  %4816 = vmatpush3.bf16.msra.mxu1 %v5469_v38  ;;  %v3091_v39 = vpop.f32.mrb[44].mxu0  ;;  %v5491_v0 = vld [vmem:[%s7198_s5 + $0x128] sm:$0xff]   ;;  %v5508_v38 = vld [vmem:[%s7200_s7 + $0x70] sm:$0xff]  }
 0x377   : > { %v5001_v14 = vadd.f32 %v3091_v39, %v2727_v18  ;;  %v3093_v6 = vpop.f32.mrb[45].mxu0  ;;  %4817 = vmatprep.subr.bf16.mxu1 %v5470_v46  ;;  %v5510_v46 = vld [vmem:[%s7200_s7 + $0x78] sm:$0xff]   ;;  %v5563_v18 = vmov 0.0  }
 0x378   : > { %v5003_v54 = vadd.f32 %v3093_v6, %v2729_v11  ;;  %v3095_v17 = vpop.f32.mrb[46].mxu0  ;;  %3603 = vmatprep.mubr.bf16.mxu1 %v4770_v2 }
 0x379   : > { %v3112_v35 = vmax.f32 %v5001_v14, 0.0  ;;  %v5005_v52 = vadd.f32 %v3095_v17, %v6844_v27  ;;  %v3097_v57 = vpop.f32.mrb[47].mxu0  ;;  %3604 = vmatmul.mubr.bf16.gmra.mrb[52].mxu1 %v4769_v59 }
 0x37a   : > { %v3113_v58 = vmax.f32 %v5003_v54, 0.0  ;;  %v5007_v30 = vadd.f32 %v3097_v57, %v6848_v61  ;;  %4818 = vmatpush3.bf16.msra.mxu1 %v5471_v43  ;;  %3644 = vmatprep.mubr.bf16.mxu1 %v4772_v62  ;;  %v5475_v61 = vld [vmem:[%s7198_s5 + $0xa8] sm:$0xff]  }
 0x37b   : > { %v4773_v10 = vpack.c.bf16 %v3112_v35, %v3108_v16  ;;  %v3114_v4 = vmax.f32 %v5005_v52, 0.0  ;;  %4819 = vmatprep.subr.bf16.mxu1 %v5472_v7  ;;  %v5490_v62 = vld [vmem:[%s7198_s5 + $0x168] sm:$0xff]   ;;  %v4627_v52 = vld [vmem:[%s7199_s6] ss:$0 sm:$0xff] }
 0x37c   : > { %v4774_v27 = vpack.c.bf16 %v3113_v58, %v3109_v45  ;;  %v3115_v34 = vmax.f32 %v5007_v30, 0.0 }
 0x37d   : > { %v4777_v12 = vpack.c.bf16 %v3114_v4, %v3110_v15  ;;  %v5509_v15 = vld [vmem:[%s7200_s7 + $0x30] sm:$0xff]  }
 0x37e   : > { %v4778_v48 = vpack.c.bf16 %v3115_v34, %v3111_v23  ;;  %4820 = vmatpush3.bf16.msra.mxu1 %v5473_v36  ;;  %v5511_v23 = vld [vmem:[%s7200_s7 + $0x38] sm:$0xff]  }
 0x37f   : > { %4821 = vmatprep.subr.bf16.mxu1 %v5474_v3 }
 0x382   : > { %4822 = vmatpush3.bf16.msra.mxu1 %v5475_v61 }
 0x383   : > { %4823 = vmatprep.subr.bf16.mxu1 %v5476_v49 }
 0x386   : > { %4824 = vmatpush3.bf16.msra.mxu1 %v5477_v42 }
 0x387   : > { %4825 = vmatprep.subr.bf16.mxu1 %v5478_v56 }
 0x38a   : > { %4826 = vmatpush3.bf16.msra.mxu1 %v5479_v47 }
 0x38b   : > { %4839 = vmatprep.subr.bf16.mxu1 %v5480_v63 }
 0x38d   : > { %3645 = vmatmul.mubr.bf16.vlgmr.msra.gmra.mrb[56].mxu1 %v6898_v29  ;;  %v5487_v29 = vld [vmem:[%s7198_s5 + $0x118] sm:$0xff]  }
 0x38e   : > { %3652 = vmatprep.mubr.bf16.mxu1 %v4774_v27  ;;  %4840 = vmatpush3.bf16.msra.mxu1 %v5481_v51 }
 0x38f   : > { %4841 = vmatprep.subr.bf16.mxu1 %v5482_v44 }
 0x392   : > { %4842 = vmatpush3.bf16.msra.mxu1 %v5483_v1 }
 0x393   : > { %4843 = vmatprep.subr.bf16.mxu1 %v5484_v5 }
 0x395   : > { %3653 = vmatmul.mubr.bf16.gmra.mrb[60].mxu1 %v4773_v10 }
 0x396   : > { %4844 = vmatpush3.bf16.msra.mxu1 %v5485_v19  ;;  %3693 = vmatprep.mubr.bf16.mxu1 %v6909_v33  ;;  %v5494_v33 = vld [vmem:[%s7198_s5 + $0x178] sm:$0xff]  }
 0x397   : > { %4845 = vmatprep.subr.bf16.mxu1 %v5486_v41 }
 0x39a   : > { %4846 = vmatpush3.bf16.msra.mxu1 %v5487_v29 }
 0x39b   : > { %4847 = vmatprep.subr.bf16.mxu1 %v5488_v31 }
 0x39e   : > { %4848 = vmatpush3.bf16.msra.mxu1 %v5489_v22 }
 0x39f   : > { %4849 = vmatprep.subr.bf16.mxu1 %v5490_v62 }
 0x3a2   : > { %4850 = vmatpush3.bf16.msra.mxu1 %v5491_v0 }
 0x3a3   : > { %4851 = vmatprep.subr.bf16.mxu1 %v5492_v25 }
 0x3a6   : > { %4852 = vmatpush3.bf16.msra.mxu1 %v5493_v26 }
 0x3a7   : > { %4853 = vmatprep.subr.bf16.mxu1 %v5494_v33 }
 0x3aa   : > { %4854 = vmatpush3.bf16.msra.mxu1 %v5495_v20 }
 0x3ab   : > { %4867 = vmatprep.subr.bf16.mxu1 %v5496_v21 }
 0x3ad   : > { %3694 = vmatmul.mubr.bf16.vlgmr.msra.gmra.mrb[64].mxu1 %v6905_v37  ;;  %v5499_v37 = vld [vmem:[%s7200_s7 + $0x8] sm:$0xff]  }
 0x3ae   : > { %3701 = vmatprep.mubr.bf16.mxu1 %v4778_v48  ;;  %4868 = vmatpush3.bf16.msra.mxu1 %v5497_v24 }
 0x3af   : > { %4869 = vmatprep.subr.bf16.mxu1 %v5498_v40 }
 0x3b2   : > { %4870 = vmatpush3.bf16.msra.mxu1 %v5499_v37 }
 0x3b3   : > { %4871 = vmatprep.subr.bf16.mxu1 %v5500_v8 }
 0x3b5   : > { %3702 = vmatmul.mubr.bf16.gmra.mrb[68].mxu1 %v4777_v12 }
 0x3b6   : > { %4872 = vmatpush3.bf16.msra.mxu1 %v5501_v13 }
 0x3b7   : > { %4873 = vmatprep.subr.bf16.mxu1 %v5502_v32 }
 0x3ba   : > { %4874 = vmatpush3.bf16.msra.mxu1 %v5503_v60 }
 0x3bb   : > { %4875 = vmatprep.subr.bf16.mxu1 %v5504_v50 }
 0x3be   : > { %4876 = vmatpush3.bf16.msra.mxu1 %v5505_v53 }
 0x3bf   : > { %4877 = vmatprep.subr.bf16.mxu1 %v5506_v28  ;;  %v5512_v28 = vld [vmem:[%s7200_s7 + $0x80] sm:$0xff]  }
 0x3c2   : > { %4878 = vmatpush3.bf16.msra.mxu1 %v5507_v55 }
 0x3c3   : > { %4879 = vmatprep.subr.bf16.mxu1 %v5508_v38 }
 0x3c6   : > { %4880 = vmatpush3.bf16.msra.mxu1 %v5509_v15  ;;  %v5513_v15 = vld [vmem:[%s7200_s7 + $0x88] sm:$0xff]  }
 0x3c7   : > { %4881 = vmatprep.subr.bf16.mxu1 %v5510_v46  ;;  %v5514_v46 = vld [vmem:[%s7200_s7 + $0x90] sm:$0xff]  }
 0x3ca   : > { %4882 = vmatpush3.bf16.msra.mxu1 %v5511_v23  ;;  %v5516_v23 = vld [vmem:[%s7200_s7 + $0xa0] sm:$0xff]  }
 0x3cb   : > { %4916 = vmatprep.subr.bf16.mxu1 %v5563_v18 }
 0x440   : > { %v4799_v59 = vpop.f32.mrb[48].mxu1 }
 0x441   : > { %v4800_v11 = vpop.f32.mrb[49].mxu1 }
 0x442   : > { %v4801_v2 = vadd.f32 %v4800_v11, %v4799_v59  ;;  %v4802_v39 = vpop.f32.mrb[50].mxu1  ;;  %v5517_v59 = vld [vmem:[%s7200_s7 + $0xa8] sm:$0xff]   ;;  %v5518_v11 = vld [vmem:[%s7200_s7 + $0xb0] sm:$0xff]  }
 0x443   : > { %v4803_v43 = vpop.f32.mrb[51].mxu1 }
 0x444   : > { %v4804_v14 = vadd.f32 %v4803_v43, %v4802_v39  ;;  %v3598_v58 = vadd.f32 %v4801_v2, %v4627_v52  ;;  %v5519_v2 = vld [vmem:[%s7200_s7 + $0xb8] sm:$0xff]   ;;  %v5520_v39 = vld [vmem:[%s7202_s9] sm:$0xff]   ;;  %v5521_v43 = vld [vmem:[%s7202_s9 + $0x8] sm:$0xff]  }
 0x446   : > { %v3601_v4 = vadd.f32 %v4804_v14, %v4627_v52  ;;  %v5522_v14 = vld [vmem:[%s7202_s9 + $0x10] sm:$0xff]  }
 0x44c   : > { %v4805_v6 = vpop.f32.mrb[52].mxu1 }
 0x44d   : > { %v4806_v7 = vpop.f32.mrb[53].mxu1 }
 0x44e   : > { %v4807_v54 = vadd.f32 %v4806_v7, %v4805_v6  ;;  %v4808_v17 = vpop.f32.mrb[54].mxu1  ;;  %v5523_v6 = vld [vmem:[%s7202_s9 + $0x18] sm:$0xff]   ;;  %v5524_v7 = vld [vmem:[%s7202_s9 + $0x20] sm:$0xff]  }
 0x44f   : > { %v4809_v16 = vpop.f32.mrb[55].mxu1 }
 0x450   : > { %v4810_v35 = vadd.f32 %v4809_v16, %v4808_v17  ;;  %v3606_v61 = vadd.f32 %v4807_v54, %v4627_v52  ;;  %v5525_v54 = vld [vmem:[%s7202_s9 + $0x28] sm:$0xff]   ;;  %v5526_v17 = vld [vmem:[%s7202_s9 + $0x30] sm:$0xff]   ;;  %v5527_v16 = vld [vmem:[%s7202_s9 + $0x38] sm:$0xff]  }
 0x452   : > { %v3609_v47 = vadd.f32 %v4810_v35, %v4627_v52 }
 0x460   : > { %v4827_v57 = vpop.f32.mrb[56].mxu1 }
 0x461   : > { %v4828_v45 = vpop.f32.mrb[57].mxu1 }
 0x462   : > { %v4829_v30 = vadd.f32 %v4828_v45, %v4827_v57  ;;  %v4830_v36 = vpop.f32.mrb[58].mxu1  ;;  %v4678_v57 = vld [vmem:[%s7201_s8] ss:$0 sm:$0xff] }
 0x463   : > { %v4831_v10 = vpop.f32.mrb[59].mxu1 }
 0x464   : > { %v3647_v3 = vadd.f32 %v4829_v30, %v3598_v58  ;;  %v4832_v27 = vadd.f32 %v4831_v10, %v4830_v36 }
 0x466   : > { %v3650_v34 = vadd.f32 %v4832_v27, %v3601_v4 }
 0x468   : > { %v4833_v12 = vpop.f32.mrb[60].mxu1 }
 0x469   : > { %v4834_v48 = vpop.f32.mrb[61].mxu1 }
 0x46a   : > { %v4835_v49 = vadd.f32 %v4834_v48, %v4833_v12  ;;  %v4836_v42 = vpop.f32.mrb[62].mxu1 }
 0x46b   : > { %v4837_v56 = vpop.f32.mrb[63].mxu1 }
 0x46c   : > { %v3655_v63 = vadd.f32 %v4835_v49, %v3606_v61  ;;  %v4838_v51 = vadd.f32 %v4837_v56, %v4836_v42 }
 0x46e   : > { %v3658_v44 = vadd.f32 %v4838_v51, %v3609_v47 }
 0x480   : > { %v4855_v1 = vpop.f32.mrb[64].mxu1 }
 0x481   : > { %v4856_v5 = vpop.f32.mrb[65].mxu1 }
 0x482   : > { %v4857_v19 = vadd.f32 %v4856_v5, %v4855_v1  ;;  %v4858_v41 = vpop.f32.mrb[66].mxu1  ;;  %v5529_v1 = vld [vmem:[%s7204_s11 + $0x8] sm:$0xff]   ;;  %v5530_v5 = vld [vmem:[%s7204_s11 + $0x10] sm:$0xff]  }
 0x483   : > { %v4859_v29 = vpop.f32.mrb[67].mxu1 }
 0x484   : > { %v3696_v31 = vadd.f32 %v4857_v19, %v3647_v3  ;;  %v4860_v22 = vadd.f32 %v4859_v29, %v4858_v41  ;;  %v5531_v19 = vld [vmem:[%s7204_s11 + $0x18] sm:$0xff]   ;;  %v5532_v41 = vld [vmem:[%s7204_s11 + $0x20] sm:$0xff]   ;;  %v5533_v29 = vld [vmem:[%s7204_s11 + $0x28] sm:$0xff]  }
 0x486   : > { %v3699_v62 = vadd.f32 %v4860_v22, %v3650_v34  ;;  %v3710_v0 = vmax.f32 %v3696_v31, 0.0  ;;  %v5534_v31 = vld [vmem:[%s7204_s11 + $0x30] sm:$0xff]   ;;  %v5535_v22 = vld [vmem:[%s7204_s11 + $0x38] sm:$0xff]  }
 0x488   : > { %v3711_v25 = vmax.f32 %v3699_v62, 0.0  ;;  %v4861_v26 = vpop.f32.mrb[68].mxu1  ;;  %v4705_v62 = vld [vmem:[%s7203_s10] ss:$0 sm:$0xff] }
 0x489   : > { %v4862_v33 = vpop.f32.mrb[69].mxu1 }
 0x48a   : > { %v3714_v20 = vpack.c.bf16 %v3711_v25, %v3710_v0  ;;  %v4863_v21 = vadd.f32 %v4862_v33, %v4861_v26  ;;  %v4864_v24 = vpop.f32.mrb[70].mxu1 }
 0x48b   : > { %v4865_v40 = vpop.f32.mrb[71].mxu1 }
 0x48c   : > { %v3704_v37 = vadd.f32 %v4863_v21, %v3655_v63  ;;  %v4866_v8 = vadd.f32 %v4865_v40, %v4864_v24  ;;  %v3719_v13 = vunpack.c.h.b16 %v3714_v20  ;;  %v5528_v63 = vld [vmem:[%s7204_s11] sm:$0xff]  }
 0x48e   : > { %v3712_v32 = vmax.f32 %v3704_v37, 0.0  ;;  %v3707_v60 = vadd.f32 %v4866_v8, %v3658_v44  ;;  %v3722_v55 = vpack.c.b16 %v3719_v13, %v6209_v9  ;;  %v5515_v9 = vld [vmem:[%s7200_s7 + $0x98] sm:$0xff]  }
 0x490   : > { %v3713_v50 = vmax.f32 %v3707_v60, 0.0  ;;  %v4779_v53 = vpack.c.bf16 %v3712_v32, %v3710_v0 }
 0x492   : > { %v4780_v38 = vpack.c.bf16 %v3713_v50, %v3711_v25  ;;  %3959 = vmatprep.mubr.bf16.mxu1 %v4779_v53 }
 0x493   : > { %3960 = vmatmul.mubr.bf16.vlgmr.msra.gmra.mrb[72].mxu1 %v3722_v55 }
 0x494   : > { %4917 = vmatpush3.bf16.msra.mxu1 %v5512_v28  ;;  %4932 = vmatprep.mubr.msk.bf16.mxu1 %vm5564_vm3, %v5563_v18 }
 0x495   : > { %4918 = vmatprep.subr.bf16.mxu1 %v5563_v18 }
 0x498   : > { %4919 = vmatpush3.bf16.msra.mxu1 %v5513_v15 }
 0x499   : > { %4920 = vmatprep.subr.bf16.mxu1 %v5563_v18 }
 0x49c   : > { %4921 = vmatpush3.bf16.msra.mxu1 %v5514_v46 }
 0x49d   : > { %4922 = vmatprep.subr.bf16.mxu1 %v5563_v18 }
 0x4a0   : > { %4923 = vmatpush3.bf16.msra.mxu1 %v5515_v9 }
 0x4a1   : > { %4924 = vmatprep.subr.bf16.mxu1 %v5563_v18 }
 0x4a4   : > { %4925 = vmatpush3.bf16.msra.mxu1 %v5516_v23 }
 0x4a5   : > { %4926 = vmatprep.subr.bf16.mxu1 %v5563_v18 }
 0x4a8   : > { %4927 = vmatpush3.bf16.msra.mxu1 %v5517_v59 }
 0x4a9   : > { %4928 = vmatprep.subr.bf16.mxu1 %v5563_v18 }
 0x4ac   : > { %4929 = vmatpush3.bf16.msra.mxu1 %v5518_v11 }
 0x4ad   : > { %4930 = vmatprep.subr.bf16.mxu1 %v5563_v18 }
 0x4b0   : > { %4931 = vmatpush3.bf16.msra.mxu1 %v5519_v2 }
 0x4b1   : > { %4936 = vmatprep.subr.bf16.mxu1 %v5563_v18 }
 0x4b3   : > { %4933 = vmatmul.mubr.bf16.vlgmr.msra.gmra.mrb[76].mxu1 %v4780_v38 }
 0x4b4   : > { %4952 = vmatprep.mubr.msk.bf16.mxu1 %vm5564_vm3, %v5563_v18  ;;  %4937 = vmatpush3.bf16.msra.mxu1 %v5520_v39 }
 0x4b5   : > { %4938 = vmatprep.subr.bf16.mxu1 %v5563_v18 }
 0x4b8   : > { %4939 = vmatpush3.bf16.msra.mxu1 %v5521_v43 }
 0x4b9   : > { %4940 = vmatprep.subr.bf16.mxu1 %v5563_v18 }
 0x4bc   : > { %4941 = vmatpush3.bf16.msra.mxu1 %v5522_v14 }
 0x4bd   : > { %4942 = vmatprep.subr.bf16.mxu1 %v5563_v18 }
 0x4c0   : > { %4943 = vmatpush3.bf16.msra.mxu1 %v5523_v6 }
 0x4c1   : > { %4944 = vmatprep.subr.bf16.mxu1 %v5563_v18 }
 0x4c4   : > { %4945 = vmatpush3.bf16.msra.mxu1 %v5524_v7 }
 0x4c5   : > { %4946 = vmatprep.subr.bf16.mxu1 %v5563_v18 }
 0x4c8   : > { %4947 = vmatpush3.bf16.msra.mxu1 %v5525_v54 }
 0x4c9   : > { %4948 = vmatprep.subr.bf16.mxu1 %v5563_v18 }
 0x4cc   : > { %4949 = vmatpush3.bf16.msra.mxu1 %v5526_v17 }
 0x4cd   : > { %4950 = vmatprep.subr.bf16.mxu1 %v5563_v18 }
 0x4d0   : > { %4951 = vmatpush3.bf16.msra.mxu1 %v5527_v16 }
 0x4d1   : > { %4956 = vmatprep.subr.bf16.mxu1 %v5563_v18 }
 0x566   : > { %v4883_v35 = vpop.f32.mrb[72].mxu1 }
 0x567   : > { %v4884_v52 = vpop.f32.mrb[73].mxu1 }
 0x568   : > { %v4885_v45 = vadd.f32 %v4884_v52, %v4883_v35  ;;  %v4886_v58 = vpop.f32.mrb[74].mxu1 }
 0x569   : > { %v4887_v30 = vpop.f32.mrb[75].mxu1 }
 0x56a   : > { %v4888_v36 = vadd.f32 %v4887_v30, %v4886_v58  ;;  %v3962_v10 = vadd.f32 %v4885_v45, %v4678_v57 }
 0x56c   : > { %v3965_v34 = vadd.f32 %v4888_v36, %v4678_v57 }
 0x586   : > { %v4002_v4 = vpop.f32.mrb[76].mxu1 }
 0x587   : > { %v4003_v3 = vadd.f32 %v4002_v4, %v3962_v10  ;;  %v4934_v27 = vpop.f32.mrb[77].mxu1 }
 0x588   : > { %v4005_v12 = vpop.f32.mrb[78].mxu1 }
 0x589   : > { %v4006_v48 = vadd.f32 %v4005_v12, %v3965_v34  ;;  %v4935_v61 = vpop.f32.mrb[79].mxu1  ;;  %v4009_v56 = vmax.f32 %v4003_v3, 0.0 }
 0x58b   : > { %v4010_v49 = vmax.f32 %v4006_v48, 0.0  ;;  %v4781_v47 = vpack.c.bf16 %v4009_v56, %v4009_v56 }
 0x58d   : > { %v4782_v42 = vpack.c.bf16 %v4010_v49, %v4010_v49 }
 0x58f   : > { %4017 = vrot.lane.b32.xlu0 %v4782_v42, %s5562_s21 }
 0x601   : > { %v4018_v51 = vpop.permute.xlu0 %4017 }
 0x602   : > { %v4021_v44 = vsel %vm784_vm1, %v4781_v47, %v4018_v51 }
 0x603   : > { %4953 = vmatmul.mubr.bf16.vlgmr.msra.gmra.mrb[80].mxu1 %v4021_v44 }
 0x604   : > { %4957 = vmatpush3.bf16.msra.mxu1 %v5528_v63  ;;  %4972 = vmatprep.mubr.msk.bf16.mxu1 %vm5564_vm3, %v5563_v18 }
 0x605   : > { %4958 = vmatprep.subr.bf16.mxu1 %v5563_v18 }
 0x608   : > { %4959 = vmatpush3.bf16.msra.mxu1 %v5529_v1 }
 0x609   : > { %4960 = vmatprep.subr.bf16.mxu1 %v5563_v18 }
 0x60c   : > { %4961 = vmatpush3.bf16.msra.mxu1 %v5530_v5 }
 0x60d   : > { %4962 = vmatprep.subr.bf16.mxu1 %v5563_v18 }
 0x610   : > { %4963 = vmatpush3.bf16.msra.mxu1 %v5531_v19 }
 0x611   : > { %4964 = vmatprep.subr.bf16.mxu1 %v5563_v18 }
 0x614   : > { %4965 = vmatpush3.bf16.msra.mxu1 %v5532_v41 }
 0x615   : > { %4966 = vmatprep.subr.bf16.mxu1 %v5563_v18 }
 0x618   : > { %4967 = vmatpush3.bf16.msra.mxu1 %v5533_v29 }
 0x619   : > { %4968 = vmatprep.subr.bf16.mxu1 %v5563_v18 }
 0x61c   : > { %4969 = vmatpush3.bf16.msra.mxu1 %v5534_v31 }
 0x61d   : > { %4970 = vmatprep.subr.bf16.mxu1 %v5563_v18  ;;  %v4714_v18 = vld [vmem:[%s7205_s12] ss:$0 sm:$0xff] }
 0x620   : > { %4971 = vmatpush3.bf16.msra.mxu1 %v5535_v22 }
 0x6d6   : > { %v4128_v0 = vpop.f32.mrb[80].mxu1 }
 0x6d7   : > { %v4129_v25 = vadd.f32 %v4705_v62, %v4128_v0  ;;  %v4954_v26 = vpop.f32.mrb[81].mxu1 }
 0x6d8   : > { %v4131_v33 = vpop.f32.mrb[82].mxu1 }
 0x6d9   : > { %v4134_v20 = vmax.f32 %v4129_v25, 0.0  ;;  %v4955_v21 = vpop.f32.mrb[83].mxu1 }
 0x6db   : > { %v4135_v24 = vpack.c.bf16 %v4134_v20, %v4134_v20 }
 0x6dd   : > { %4973 = vmatmul.mubr.bf16.vlgmr.msra.gmra.mrb[84].mxu1 %v4135_v24 }
 0x7b0   : > { %v4241_v40 = vpop.f32.mrb[84].mxu1 }
 0x7b1   : > { %v4242_v37 = vadd.f32 %v4714_v18, %v4241_v40  ;;  %v4974_v8 = vpop.f32.mrb[85].mxu1 }
 0x7b2   : > { %v4244_v13 = vpop.f32.mrb[86].mxu1 }
 0x7b3   : > { %4248 = vst.msk [vmem:[%s603_s22] sm:$0xff] %vm4247_vm4, %v4242_v37  ;;  %v4975_v32 = vpop.f32.mrb[87].mxu1 }
 0x7b4 PF: > { %p20_p9 = scmp.ge.s32.totalorder %s5652_s29, 4   ;;  %s7209_s25 = smov %s5554_s26 }
 0x7b5   : > { %s7210_s26 = smov %s5661_s15  ;;  %s7211_s27 = smov %s5652_s29 }
 0x7b6   :  { %22 = sbr.rel (!%p20_p9) target bundleno = 2 (0x2), region = 148 }

</bundles_post_ra>
